<compile_context>
chip_gen: v5e
topology: v5e:2x2
jax: 0.10.0
libtpu: 0.0.40
codegen_flags: <defaults>
</compile_context>

<pallas_src>
import functools

import jax
import jax.numpy as jnp
import numpy as np
from jax.experimental import pallas as pl
from jax.experimental.pallas import tpu as pltpu

FEATURES = 24        # length of the hard-coded Focus vector in the PyTorch module
_LANES = 128
# Flat-axis chunks must be a multiple of lcm(24, 128) = 384 so that
# (a) the lane axis stays 128-dense and (b) every chunk starts on a feature
# boundary, letting a single grouping matrix serve every chunk.
_COL_QUANTUM = 384


def _l0_loss_kernel(k_ref, x_ref, z_ref, g_ref, out_ref, acc_ref, *,
                    batch, flat_len, tb, tc):
    b = pl.program_id(0)
    c = pl.program_id(1)
    k = k_ref[0]

    @pl.when(c == 0)
    def _init():
        acc_ref[...] = jnp.zeros_like(acc_ref)

    x = x_ref[...].astype(jnp.float32)            # (tb, tc)
    z = z_ref[...].astype(jnp.float32)
    d = x - z
    r = jnp.tanh(d * d * k)                       # tanh(L2 * k), lane-dense EUP work

    if flat_len % tc != 0:
        # Ragged last chunk along the flattened S*F axis: out-of-range columns
        # hold unspecified padding, zero them before accumulating.
        col = jax.lax.broadcasted_iota(jnp.int32, r.shape, 1) + c * tc
        r = jnp.where(col < flat_len, r, 0.0)

    # Grouped per-feature reduction on the otherwise-idle MXU:
    #   acc[i, f] += sum_j r[i, j] * (j % 24 == f);   columns f >= 24 stay 0.
    acc_ref[...] += jnp.dot(r, g_ref[...], preferred_element_type=jnp.float32)

    @pl.when(c == pl.num_programs(1) - 1)
    def _finalize():
        r3 = jnp.tanh(acc_ref[...] * k)           # (tb, 128); cols >= 24 are tanh(0)=0
        if batch % tb != 0:
            # Ragged last batch chunk: drop out-of-range rows.
            row = jax.lax.broadcasted_iota(jnp.int32, r3.shape, 0) + b * tb
            r3 = jnp.where(row < batch, r3, 0.0)
        partial = jnp.sum(r3)
        # Lane-dense, unmasked (8,128) store of this batch chunk's partial sum.
        out_ref[...] = jnp.broadcast_to(partial, out_ref.shape)


def l0_loss(x, z, k, *, block_rows=None, block_cols=None):
    """Pallas implementation of L0Loss.forward.  x, z: (B, S, 24)."""
    assert x.shape == z.shape and x.ndim == 3
    B, S, F = x.shape
    assert F == FEATURES, f"feature dim must be {FEATURES} (hard-coded Focus)"
    L = S * F

    # Zero-copy row-major flatten; no transpose, no padding copies.
    x2 = x.reshape(B, L)
    z2 = z.reshape(B, L)

    # ---- batch chunk size (second-to-last block dim: multiple of 8, or == B).
    if block_rows is not None:
        tb = int(block_rows)
    elif B <= 8:
        tb = B
    else:
        # >= 2 chunks so both v7x TensorCores get work; cap at 128 rows.
        tb = min(128, max(8, ((B + 1) // 2) // 8 * 8))
    assert tb == B or tb % 8 == 0
    nb = pl.cdiv(B, tb)

    # ---- flat-axis chunk size (last block dim: multiple of 384, or == L).
    if block_cols is not None:
        tc = int(block_cols)
    elif L <= 3072:
        tc = L
    else:
        tc = 3072                                  # ~1.5 MiB f32 blocks at tb=128
    assert tc == L or tc % _COL_QUANTUM == 0
    nc = pl.cdiv(L, tc)

    # One-hot grouping matrix: g[j, f] = (j % 24 == f); columns >= 24 are zero,
    # so tanh(acc * k) is exactly 0 there and contributes nothing to the sum.
    g = (jnp.arange(tc, dtype=jnp.int32)[:, None] % FEATURES
         == jnp.arange(_LANES, dtype=jnp.int32)[None, :]).astype(jnp.float32)

    k_arr = jnp.reshape(jnp.asarray(k, dtype=jnp.float32), (1,))
    kernel = functools.partial(_l0_loss_kernel, batch=B, flat_len=L, tb=tb, tc=tc)

    partials = pl.pallas_call(
        kernel,
        out_shape=jax.ShapeDtypeStruct((nb, 8, _LANES), jnp.float32),
        grid_spec=pltpu.PrefetchScalarGridSpec(
            num_scalar_prefetch=0,
            grid=(nb, nc),                                     # reduction axis last
            in_specs=[
                pl.BlockSpec(memory_space=pltpu.MemorySpace.SMEM),   # k scalar
                pl.BlockSpec((tb, tc), lambda b, c: (b, c)),         # x (flattened)
                pl.BlockSpec((tb, tc), lambda b, c: (b, c)),         # z (flattened)
                pl.BlockSpec((tc, _LANES), lambda b, c: (0, 0)),     # grouping matrix
            ],
            out_specs=pl.BlockSpec((1, 8, _LANES), lambda b, c: (b, 0, 0)),
            scratch_shapes=[pltpu.VMEM((tb, _LANES), jnp.float32)],  # per-feature acc
        ),
        compiler_params=pltpu.CompilerParams(
            dimension_semantics=("parallel", "arbitrary"),
            vmem_limit_bytes=32 * 1024 * 1024,     # ~14 MiB used; safe on v5e/v6e/v7x
        ),
    )(k_arr, x2, z2, g)

    # Tiny epilogue: reduce the per-batch-chunk partial sums.
    return jnp.sum(partials[:, 0, 0])


def l0_loss_ref(x, z, k):
    """Plain-JAX reference mirroring the PyTorch forward exactly."""
    l2 = (x.astype(jnp.float32) - z.astype(jnp.float32)) ** 2
    l2 = l2 * jnp.ones((x.shape[1], x.shape[2]), jnp.float32)   # all-ones Focus2D
    r = jnp.tanh(l2 * k)
    r2 = jnp.sum(r, axis=1)
    r3 = jnp.tanh(r2 * k)
    return jnp.sum(r3)


if __name__ == "__main__":
    key = jax.random.PRNGKey(0)
    kx, kz = jax.random.split(key)

    # Small deterministic inputs: F=24 is fixed by the Focus vector; S=128 makes
    # the flattened axis exactly one 3072-wide lane-dense chunk.
    B, S, F = 4, 128, FEATURES
    x = jax.random.uniform(kx, (B, S, F), dtype=jnp.float32)
    z = jax.random.uniform(kz, (B, S, F), dtype=jnp.float32)

    # Two k values exercise both non-saturated and saturated tanh regimes and
    # reuse the same compiled kernel (k lives in SMEM, not in a closure).
    for k in (0.05, 5.0):
        loss = l0_loss(x, z, k)
        jax.block_until_ready(loss)
        ref = l0_loss_ref(x, z, k)
        np.testing.assert_allclose(np.asarray(loss), np.asarray(ref),
                                   rtol=1e-5, atol=1e-4)

    # Ragged batch (10 = 8 + 2 rows) and ragged flat-axis chunks
    # (24*40 = 960 = 384 + 384 + 192): exercises both in-kernel masks and the
    # multi-chunk accumulator path, with no padding copies.
    B2, S2 = 10, 40
    x2 = jax.random.uniform(kx, (B2, S2, F), dtype=jnp.float32)
    z2 = jax.random.uniform(kz, (B2, S2, F), dtype=jnp.float32)
    loss2 = l0_loss(x2, z2, 0.05, block_cols=384)
    jax.block_until_ready(loss2)
    ref2 = l0_loss_ref(x2, z2, 0.05)
    np.testing.assert_allclose(np.asarray(loss2), np.asarray(ref2),
                               rtol=1e-5, atol=1e-4)

    print("KERNEL_OK")
</pallas_src>

<mosaic_0001>
module attributes {stable_mosaic.version = 11 : i64} {
  func.func @_l0_loss_kernel(%arg0: i32, %arg1: i32, %arg2: memref<1xf32, #tpu.memory_space<smem>>, %arg3: memref<4x3072xf32, #tpu.memory_space<vmem>>, %arg4: memref<4x3072xf32, #tpu.memory_space<vmem>>, %arg5: memref<3072x128xf32, #tpu.memory_space<vmem>>, %arg6: memref<1x8x128xf32, #tpu.memory_space<vmem>>, %arg7: memref<4x128xf32, #tpu.memory_space<vmem>>) attributes {dimension_semantics = [#tpu.dimension_semantics<parallel>, #tpu.dimension_semantics<arbitrary>], iteration_bounds = array<i64: 1, 1>, scalar_prefetch = 0 : i64, scratch_operands = 1 : i64, tpu.core_type = #tpu.core_type<tc>, window_params = [{transform_indices = @transform_0, window_bounds = array<i64: 1>}, {transform_indices = @transform_1, window_bounds = array<i64: 4, 3072>}, {transform_indices = @transform_2, window_bounds = array<i64: 4, 3072>}, {pipeline_mode = #tpu.pipeline_mode<synchronous>, transform_indices = @transform_3, window_bounds = array<i64: 3072, 128>}, {transform_indices = @transform_4, window_bounds = array<i64: 1, 8, 128>}]} {
    %c0 = arith.constant 0 : index
    %0 = memref.load %arg2[%c0] : memref<1xf32, #tpu.memory_space<smem>>
    %c0_i32 = arith.constant 0 : i32
    %1 = arith.cmpi eq, %arg1, %c0_i32 : i32
    %2 = arith.extui %1 : i1 to i32
    %c0_i32_0 = arith.constant 0 : i32
    %3 = arith.cmpi ne, %2, %c0_i32_0 : i32
    scf.if %3 {
      %cst_13 = arith.constant 0.000000e+00 : f32
      %19 = vector.broadcast %cst_13 : f32 to vector<4x128xf32>
      %c0_14 = arith.constant 0 : index
      %c0_15 = arith.constant 0 : index
      %20 = vector.load %arg7[%c0_14, %c0_15] : memref<4x128xf32, #tpu.memory_space<vmem>>, vector<4x128xf32>
      tpu.vector_store %arg7[%c0_14, %c0_15], %19 {strides = array<i32>} : memref<4x128xf32, #tpu.memory_space<vmem>>, vector<4x128xf32>,
    } else {
    }
    %c0_1 = arith.constant 0 : index
    %c0_2 = arith.constant 0 : index
    %4 = vector.load %arg3[%c0_1, %c0_2] : memref<4x3072xf32, #tpu.memory_space<vmem>>, vector<4x3072xf32>
    %c0_3 = arith.constant 0 : index
    %c0_4 = arith.constant 0 : index
    %5 = vector.load %arg4[%c0_3, %c0_4] : memref<4x3072xf32, #tpu.memory_space<vmem>>, vector<4x3072xf32>
    %6 = arith.subf %4, %5 : vector<4x3072xf32>
    %7 = arith.mulf %6, %6 : vector<4x3072xf32>
    %8 = vector.broadcast %0 : f32 to vector<4x3072xf32>
    %9 = arith.mulf %7, %8 : vector<4x3072xf32>
    %10 = math.tanh %9 : vector<4x3072xf32>
    %c0_5 = arith.constant 0 : index
    %c0_6 = arith.constant 0 : index
    %11 = vector.load %arg7[%c0_5, %c0_6] : memref<4x128xf32, #tpu.memory_space<vmem>>, vector<4x128xf32>
    %c0_7 = arith.constant 0 : index
    %c0_8 = arith.constant 0 : index
    %12 = vector.load %arg5[%c0_7, %c0_8] : memref<3072x128xf32, #tpu.memory_space<vmem>>, vector<3072x128xf32>
    %cst = arith.constant dense<0.000000e+00> : vector<4x128xf32>
    %13 = tpu.matmul %10, %12, %cst {dimension_numbers = #tpu.dot_dimension_numbers<[1], [0], [0], [1], [0, 0, 1, 1], [], []>} : vector<4x3072xf32>, vector<3072x128xf32>, vector<4x128xf32> -> vector<4x128xf32>
    %14 = arith.addf %11, %13 : vector<4x128xf32>
    %c0_9 = arith.constant 0 : index
    %c0_10 = arith.constant 0 : index
    %15 = vector.load %arg7[%c0_9, %c0_10] : memref<4x128xf32, #tpu.memory_space<vmem>>, vector<4x128xf32>
    tpu.vector_store %arg7[%c0_9, %c0_10], %14 {strides = array<i32>} : memref<4x128xf32, #tpu.memory_space<vmem>>, vector<4x128xf32>,
    %c0_i32_11 = arith.constant 0 : i32
    %16 = arith.cmpi eq, %arg1, %c0_i32_11 : i32
    %17 = arith.extui %16 : i1 to i32
    %c0_i32_12 = arith.constant 0 : i32
    %18 = arith.cmpi ne, %17, %c0_i32_12 : i32
    scf.if %18 {
      %c0_13 = arith.constant 0 : index
      %c0_14 = arith.constant 0 : index
      %19 = vector.load %arg7[%c0_13, %c0_14] : memref<4x128xf32, #tpu.memory_space<vmem>>, vector<4x128xf32>
      %20 = vector.broadcast %0 : f32 to vector<4x128xf32>
      %21 = arith.mulf %19, %20 : vector<4x128xf32>
      %22 = math.tanh %21 : vector<4x128xf32>
      %23 = vector.shape_cast %22 : vector<4x128xf32> to vector<1x4x128xf32>
      %cst_15 = arith.constant dense<0.000000e+00> : vector<1xf32>
      %24 = vector.multi_reduction <add>, %23, %cst_15 [1, 2] : vector<1x4x128xf32> to vector<1xf32>
      %25 = vector.shape_cast %24 : vector<1xf32> to vector<1x1x1xf32>
      %26 = vector.extract %25[0, 0, 0] : f32 from vector<1x1x1xf32>
      %27 = vector.broadcast %26 : f32 to vector<1x8x128xf32>
      %c0_16 = arith.constant 0 : index
      %c0_17 = arith.constant 0 : index
      %c0_18 = arith.constant 0 : index
      %28 = vector.load %arg6[%c0_16, %c0_17, %c0_18] : memref<1x8x128xf32, #tpu.memory_space<vmem>>, vector<1x8x128xf32>
      tpu.vector_store %arg6[%c0_16, %c0_17, %c0_18], %27 {strides = array<i32>} : memref<1x8x128xf32, #tpu.memory_space<vmem>>, vector<1x8x128xf32>,
    } else {
    }
    return
  }
  func.func @transform_0(%arg0: i32, %arg1: i32) -> i32 {
    %c0_i32 = arith.constant 0 : i32
    %c0_i32_0 = arith.constant 0 : i32
    return %c0_i32 : i32
  }
  func.func @transform_1(%arg0: i32, %arg1: i32) -> (i32, i32) {
    %c0_i32 = arith.constant 0 : i32
    return %arg0, %arg1 : i32, i32
  }
  func.func @transform_2(%arg0: i32, %arg1: i32) -> (i32, i32) {
    %c0_i32 = arith.constant 0 : i32
    return %arg0, %arg1 : i32, i32
  }
  func.func @transform_3(%arg0: i32, %arg1: i32) -> (i32, i32) {
    %c0_i32 = arith.constant 0 : i32
    %c0_i32_0 = arith.constant 0 : i32
    %c0_i32_1 = arith.constant 0 : i32
    return %c0_i32, %c0_i32_0 : i32, i32
  }
  func.func @transform_4(%arg0: i32, %arg1: i32) -> (i32, i32, i32) {
    %c0_i32 = arith.constant 0 : i32
    %c0_i32_0 = arith.constant 0 : i32
    %c0_i32_1 = arith.constant 0 : i32
    return %arg0, %c0_i32, %c0_i32_0 : i32, i32, i32
  }
}

</mosaic_0001>

<bundles_post_ra>
// kernel: tpu_custom_call.1
= control target key start
LH: loop header
LB: loop body
LE: loop exit
PB: predicated region body
PF: predicated region fallthrough
CT: control target
= control target key end

     0   :  { %10 = vsyncpa [#allocation5], 0  ;;  %s1331_s0 = inlined_call_operand.<no memory space> [shape: f32[1], index: 0, kind: input, shape index: {}]   ;;  %s1332_s1 = inlined_call_operand.hbm [shape: f32[4,3072], index: 1, kind: input, shape index: {}]   ;;  %s1333_s2 = inlined_call_operand.hbm [shape: f32[4,3072], index: 2, kind: input, shape index: {}]   ;;  %s1334_s3 = inlined_call_operand.hbm [shape: f32[3072,128], index: 3, kind: input, shape index: {}]   ;;  %s1335_s4 = inlined_call_operand.hbm [shape: f32[1,8,128], index: 4, kind: output, shape index: {}]  }
   0x1   :  { %11 = vsyncpa [#allocation8], 0  ;;  %s31_s17 = sshll.u32 %s1333_s2, 4  ;;  %s32_s17 = int_to_ptr.hbm [resolvable:$true] %s31_s17 }
   0x2   :  { %12 = vsyncpa [#allocation6], 0  ;;  %s1257_s18 = smov [#allocation7]   ;;  %s20_s22 = sshll.u32 %s1332_s1, 4  ;;  %s21_s22 = int_to_ptr.hbm [resolvable:$true] %s20_s22 }
   0x3   :  { %s33_s19 = sshll.u32 %s1257_s18, 4  ;;  %s1258_s23 = smov [#allocation4]   ;;  %s34_s19 = int_to_ptr.vmem [resolvable:$true] %s33_s19 }
   0x4   :  { %36 = dma.hbm_to_vmem [thread:$0]  %s32_s17, 1536, %s34_s19, [#allocation8]  }
   0x5   :  { %s22_s24 = sshll.u32 %s1258_s23, 4  ;;  %s41_s27 = sshll.u32 %s1334_s3, 4  ;;  %s23_s24 = int_to_ptr.vmem [resolvable:$true] %s22_s24  ;;  %s42_s27 = int_to_ptr.hbm [resolvable:$true] %s41_s27 }
   0x6   :  { %25 = dma.hbm_to_vmem [thread:$0]  %s21_s22, 1536, %s23_s24, [#allocation5]  }
   0x7   :  { %s1259_s2 = smov [#allocation9]   ;;  %s1260_s29 = smov 128  }
   0x8   :  { %s43_s28 = sshll.u32 %s1259_s2, 4  ;;  %s1261_s30 = smov 8   ;;  %s44_s28 = int_to_ptr.vmem [resolvable:$true] %s43_s28 }
   0x9   :  { %49 = dma.hbm_to_vmem [thread:$0]  %s42_s27, 49152, %s44_s28, [#allocation8], %s1260_s29, %s1260_s29, %s1261_s30  }
   0xa   :  { %1251 = dma.done.wait [#allocation5], 1536  }
   0xb   :  { %1252 = vsyncadd [#allocation5], 4294965760 }
   0xc   :  { %1253 = dma.done.wait [#allocation8], 50688  }
   0xd   :  { %1254 = vsyncadd [#allocation8], 4294916608  ;;  %v157_v0 = vld [vmem:[#allocation9 + $0x78] sm:$0xff]  ;;  %v156_v2 = vld [vmem:[#allocation9 + $0x70] sm:$0xff]  ;;  %vm1089_vm0 = vcmask 1043456   ;;  %s1109_s8 = sshll.u32 %s1335_s4, 4  ;;  %s1110_s8 = int_to_ptr.hbm [resolvable:$true] %s1109_s8 }
   0xe   :  { %v189_v1 = vld [vmem:[#allocation9 + $0x178] sm:$0xff]  ;;  %601 = vmatpush.msra.mxu0 %v157_v0  ;;  %v188_v4 = vld [vmem:[#allocation9 + $0x170] sm:$0xff]  ;;  %v155_v6 = vld [vmem:[#allocation9 + $0x68] sm:$0xff] }
   0xf   :  { %641 = vmatpush.msra.mxu2 %v189_v1  ;;  %v173_v3 = vld [vmem:[#allocation9 + $0xf8] sm:$0xff]  ;;  %v172_v7 = vld [vmem:[#allocation9 + $0xf0] sm:$0xff]  ;;  %v187_v8 = vld [vmem:[#allocation9 + $0x168] sm:$0xff] }
  0x10   :  { %v205_v5 = vld [vmem:[#allocation9 + $0x1f8] sm:$0xff]  ;;  %621 = vmatpush.msra.mxu1 %v173_v3  ;;  %602 = vmatpush.msra.mxu0 %v156_v2  ;;  %v204_v9 = vld [vmem:[#allocation9 + $0x1f0] sm:$0xff]  ;;  %v171_v10 = vld [vmem:[#allocation9 + $0xe8] sm:$0xff] }
  0x11   :  { %661 = vmatpush.msra.mxu3 %v205_v5  ;;  %642 = vmatpush.msra.mxu2 %v188_v4  ;;  %v154_v11 = vld [vmem:[#allocation9 + $0x60] sm:$0xff]  ;;  %v203_v13 = vld [vmem:[#allocation9 + $0x1e8] sm:$0xff]  ;;  %v153_v16 = vld [vmem:[#allocation9 + $0x58] sm:$0xff] }
  0x12   :  { %622 = vmatpush.msra.mxu1 %v172_v7  ;;  %v186_v12 = vld [vmem:[#allocation9 + $0x160] sm:$0xff]  ;;  %603 = vmatpush.msra.mxu0 %v155_v6  ;;  %v185_v17 = vld [vmem:[#allocation9 + $0x158] sm:$0xff]  ;;  %v152_v20 = vld [vmem:[#allocation9 + $0x50] sm:$0xff] }
  0x13   :  { %662 = vmatpush.msra.mxu3 %v204_v9  ;;  %643 = vmatpush.msra.mxu2 %v187_v8  ;;  %v170_v14 = vld [vmem:[#allocation9 + $0xe0] sm:$0xff]  ;;  %v169_v18 = vld [vmem:[#allocation9 + $0xd8] sm:$0xff]  ;;  %v184_v21 = vld [vmem:[#allocation9 + $0x150] sm:$0xff] }
  0x14   :  { %v202_v15 = vld [vmem:[#allocation9 + $0x1e0] sm:$0xff]  ;;  %623 = vmatpush.msra.mxu1 %v171_v10  ;;  %604 = vmatpush.msra.mxu0 %v154_v11  ;;  %v201_v19 = vld [vmem:[#allocation9 + $0x1d8] sm:$0xff]  ;;  %v168_v22 = vld [vmem:[#allocation9 + $0xd0] sm:$0xff] }
  0x15   :  { %663 = vmatpush.msra.mxu3 %v203_v13  ;;  %644 = vmatpush.msra.mxu2 %v186_v12  ;;  %v200_v23 = vld [vmem:[#allocation9 + $0x1d0] sm:$0xff]  ;;  %v151_v24 = vld [vmem:[#allocation9 + $0x48] sm:$0xff]  ;;  %v150_v28 = vld [vmem:[#allocation9 + $0x40] sm:$0xff] }
  0x16   :  { %624 = vmatpush.msra.mxu1 %v170_v14  ;;  %605 = vmatpush.msra.mxu0 %v153_v16  ;;  %v183_v25 = vld [vmem:[#allocation9 + $0x148] sm:$0xff]  ;;  %v182_v29 = vld [vmem:[#allocation9 + $0x140] sm:$0xff]  ;;  %v149_v32 = vld [vmem:[#allocation9 + $0x38] sm:$0xff] }
  0x17   :  { %664 = vmatpush.msra.mxu3 %v202_v15  ;;  %645 = vmatpush.msra.mxu2 %v185_v17  ;;  %v167_v26 = vld [vmem:[#allocation9 + $0xc8] sm:$0xff]  ;;  %v166_v30 = vld [vmem:[#allocation9 + $0xc0] sm:$0xff]  ;;  %v181_v33 = vld [vmem:[#allocation9 + $0x138] sm:$0xff] }
  0x18   :  { %625 = vmatpush.msra.mxu1 %v169_v18  ;;  %606 = vmatpush.msra.mxu0 %v152_v20  ;;  %v199_v27 = vld [vmem:[#allocation9 + $0x1c8] sm:$0xff]  ;;  %v198_v31 = vld [vmem:[#allocation9 + $0x1c0] sm:$0xff]  ;;  %v165_v34 = vld [vmem:[#allocation9 + $0xb8] sm:$0xff] }
  0x19   :  { %665 = vmatpush.msra.mxu3 %v201_v19  ;;  %646 = vmatpush.msra.mxu2 %v184_v21  ;;  %v197_v35 = vld [vmem:[#allocation9 + $0x1b8] sm:$0xff]  ;;  %v148_v36 = vld [vmem:[#allocation9 + $0x30] sm:$0xff]  ;;  %v147_v40 = vld [vmem:[#allocation9 + $0x28] sm:$0xff] }
  0x1a   :  { %626 = vmatpush.msra.mxu1 %v168_v22  ;;  %607 = vmatpush.msra.mxu0 %v151_v24  ;;  %v180_v37 = vld [vmem:[#allocation9 + $0x130] sm:$0xff]  ;;  %v179_v41 = vld [vmem:[#allocation9 + $0x128] sm:$0xff]  ;;  %v146_v44 = vld [vmem:[#allocation9 + $0x20] sm:$0xff] }
  0x1b   :  { %666 = vmatpush.msra.mxu3 %v200_v23  ;;  %647 = vmatpush.msra.mxu2 %v183_v25  ;;  %v164_v38 = vld [vmem:[#allocation9 + $0xb0] sm:$0xff]  ;;  %v163_v42 = vld [vmem:[#allocation9 + $0xa8] sm:$0xff]  ;;  %v178_v45 = vld [vmem:[#allocation9 + $0x120] sm:$0xff] }
  0x1c   :  { %627 = vmatpush.msra.mxu1 %v167_v26  ;;  %608 = vmatpush.msra.mxu0 %v150_v28  ;;  %v196_v39 = vld [vmem:[#allocation9 + $0x1b0] sm:$0xff]  ;;  %v195_v43 = vld [vmem:[#allocation9 + $0x1a8] sm:$0xff]  ;;  %v162_v46 = vld [vmem:[#allocation9 + $0xa0] sm:$0xff] }
  0x1d   :  { %667 = vmatpush.msra.mxu3 %v199_v27  ;;  %648 = vmatpush.msra.mxu2 %v182_v29  ;;  %v194_v47 = vld [vmem:[#allocation9 + $0x1a0] sm:$0xff]  ;;  %v145_v48 = vld [vmem:[#allocation9 + $0x18] sm:$0xff]  ;;  %v144_v52 = vld [vmem:[#allocation9 + $0x10] sm:$0xff] }
  0x1e   :  { %628 = vmatpush.msra.mxu1 %v166_v30  ;;  %609 = vmatpush.msra.mxu0 %v149_v32  ;;  %v177_v49 = vld [vmem:[#allocation9 + $0x118] sm:$0xff]  ;;  %v176_v53 = vld [vmem:[#allocation9 + $0x110] sm:$0xff]  ;;  %v143_v56 = vld [vmem:[#allocation9 + $0x8] sm:$0xff]  ;;  %v1301_v32 = vstv %s1331_s0  ;;  %s1263_s0 = smov [#allocation10]  }
  0x1f   :  { %668 = vmatpush.msra.mxu3 %v198_v31  ;;  %649 = vmatpush.msra.mxu2 %v181_v33  ;;  %v161_v50 = vld [vmem:[#allocation9 + $0x98] sm:$0xff]  ;;  %v160_v54 = vld [vmem:[#allocation9 + $0x90] sm:$0xff]  ;;  %v175_v57 = vld [vmem:[#allocation9 + $0x108] sm:$0xff]  ;;  %s1107_s5 = sshll.u32 %s1263_s0, 4  ;;  %s1108_s5 = int_to_ptr.vmem [resolvable:$true] %s1107_s5 }
  0x20   :  { %629 = vmatpush.msra.mxu1 %v165_v34  ;;  %610 = vmatpush.msra.mxu0 %v148_v36  ;;  %v193_v51 = vld [vmem:[#allocation9 + $0x198] sm:$0xff]  ;;  %v192_v55 = vld [vmem:[#allocation9 + $0x190] sm:$0xff]  ;;  %v159_v58 = vld [vmem:[#allocation9 + $0x88] sm:$0xff] }
  0x21   :  { %669 = vmatpush.msra.mxu3 %v197_v35  ;;  %650 = vmatpush.msra.mxu2 %v180_v37  ;;  %v191_v59 = vld [vmem:[#allocation9 + $0x188] sm:$0xff]  ;;  %v142_v60 = vld [vmem:[#allocation9] sm:$0xff]  ;;  %v221_v62 = vld [vmem:[#allocation9 + $0x278] sm:$0xff] }
  0x22   :  { %630 = vmatpush.msra.mxu1 %v164_v38  ;;  %611 = vmatpush.msra.mxu0 %v147_v40  ;;  %v174_v61 = vld [vmem:[#allocation9 + $0x100] sm:$0xff]  ;;  %v253_v63 = vld [vmem:[#allocation9 + $0x378] sm:$0xff]  ;;  %v220_v2 = vld [vmem:[#allocation9 + $0x270] sm:$0xff] }
  0x23   :  { %670 = vmatpush.msra.mxu3 %v196_v39  ;;  %651 = vmatpush.msra.mxu2 %v179_v41  ;;  %v158_v0 = vld [vmem:[#allocation9 + $0x80] sm:$0xff]  ;;  %v237_v3 = vld [vmem:[#allocation9 + $0x2f8] sm:$0xff]  ;;  %v252_v4 = vld [vmem:[#allocation9 + $0x370] sm:$0xff] }
  0x24   :  { %631 = vmatpush.msra.mxu1 %v163_v42  ;;  %612 = vmatpush.msra.mxu0 %v146_v44  ;;  %v190_v1 = vld [vmem:[#allocation9 + $0x180] sm:$0xff]  ;;  %v269_v5 = vld [vmem:[#allocation9 + $0x3f8] sm:$0xff]  ;;  %v219_v6 = vld [vmem:[#allocation9 + $0x268] sm:$0xff] }
  0x25   :  { %671 = vmatpush.msra.mxu3 %v195_v43  ;;  %652 = vmatpush.msra.mxu2 %v178_v45  ;;  %v236_v7 = vld [vmem:[#allocation9 + $0x2f0] sm:$0xff]  ;;  %v251_v8 = vld [vmem:[#allocation9 + $0x368] sm:$0xff]  ;;  %v218_v10 = vld [vmem:[#allocation9 + $0x260] sm:$0xff] }
  0x26   :  { %632 = vmatpush.msra.mxu1 %v162_v46  ;;  %613 = vmatpush.msra.mxu0 %v145_v48  ;;  %v268_v9 = vld [vmem:[#allocation9 + $0x3f0] sm:$0xff]  ;;  %v235_v11 = vld [vmem:[#allocation9 + $0x2e8] sm:$0xff]  ;;  %v250_v12 = vld [vmem:[#allocation9 + $0x360] sm:$0xff] }
  0x27   :  { %672 = vmatpush.msra.mxu3 %v194_v47  ;;  %653 = vmatpush.msra.mxu2 %v177_v49  ;;  %v267_v13 = vld [vmem:[#allocation9 + $0x3e8] sm:$0xff]  ;;  %v217_v14 = vld [vmem:[#allocation9 + $0x258] sm:$0xff]  ;;  %v234_v15 = vld [vmem:[#allocation9 + $0x2e0] sm:$0xff] }
  0x28   :  { %633 = vmatpush.msra.mxu1 %v161_v50  ;;  %614 = vmatpush.msra.mxu0 %v144_v52  ;;  %v249_v16 = vld [vmem:[#allocation9 + $0x358] sm:$0xff]  ;;  %v266_v17 = vld [vmem:[#allocation9 + $0x3e0] sm:$0xff]  ;;  %v216_v18 = vld [vmem:[#allocation9 + $0x250] sm:$0xff] }
  0x29   :  { %673 = vmatpush.msra.mxu3 %v193_v51  ;;  %654 = vmatpush.msra.mxu2 %v176_v53  ;;  %v233_v19 = vld [vmem:[#allocation9 + $0x2d8] sm:$0xff]  ;;  %v248_v20 = vld [vmem:[#allocation9 + $0x350] sm:$0xff]  ;;  %v215_v22 = vld [vmem:[#allocation9 + $0x248] sm:$0xff] }
  0x2a   :  { %634 = vmatpush.msra.mxu1 %v160_v54  ;;  %615 = vmatpush.msra.mxu0 %v143_v56  ;;  %v265_v21 = vld [vmem:[#allocation9 + $0x3d8] sm:$0xff]  ;;  %v232_v23 = vld [vmem:[#allocation9 + $0x2d0] sm:$0xff]  ;;  %v69_v24 = vld [vmem:[#allocation4 + $0x8] sm:$0xff] }
  0x2b   :  { %674 = vmatpush.msra.mxu3 %v192_v55  ;;  %655 = vmatpush.msra.mxu2 %v175_v57  ;;  %v247_v25 = vld [vmem:[#allocation9 + $0x348] sm:$0xff]  ;;  %v264_v26 = vld [vmem:[#allocation9 + $0x3d0] sm:$0xff]  ;;  %v214_v28 = vld [vmem:[#allocation9 + $0x240] sm:$0xff] }
  0x2c   :  { %635 = vmatpush.msra.mxu1 %v159_v58  ;;  %616 = vmatpush.msra.mxu0 %v142_v60  ;;  %v81_v27 = vld [vmem:[#allocation7 + $0x8] sm:$0xff]  ;;  %v68_v31 = vld [vmem:[#allocation4] sm:$0xff]  ;;  %v213_v38 = vld [vmem:[#allocation9 + $0x238] sm:$0xff] }
  0x2d   :  { %675 = vmatpush.msra.mxu3 %v191_v59  ;;  %656 = vmatpush.msra.mxu2 %v174_v61  ;;  %v231_v29 = vld [vmem:[#allocation9 + $0x2c8] sm:$0xff]  ;;  %v93_v30 = vsub.f32 %v69_v24, %v81_v27  ;;  %v80_v33 = vld [vmem:[#allocation7] sm:$0xff]  ;;  %v245_v45 = vld [vmem:[#allocation9 + $0x338] sm:$0xff] }
  0x2e   :  { %681 = vmatpush.msrb.mxu0 %v221_v62  ;;  %636 = vmatpush.msra.mxu1 %v158_v0  ;;  %v73_v34 = vld [vmem:[#allocation4 + $0x28] sm:$0xff]  ;;  %v246_v36 = vld [vmem:[#allocation9 + $0x340] sm:$0xff]  ;;  %v92_v40 = vsub.f32 %v68_v31, %v80_v33  ;;  %v212_v47 = vld [vmem:[#allocation9 + $0x230] sm:$0xff] }
  0x2f   :  { %721 = vmatpush.msrb.mxu2 %v253_v63  ;;  %676 = vmatpush.msra.mxu3 %v190_v1  ;;  %v85_v35 = vld [vmem:[#allocation7 + $0x28] sm:$0xff]  ;;  %v105_v39 = vmul.f32 %v93_v30, %v93_v30  ;;  %v230_v42 = vld [vmem:[#allocation9 + $0x2c0] sm:$0xff]  ;;  %v229_v51 = vld [vmem:[#allocation9 + $0x2b8] sm:$0xff] }
  0x30   :  { %682 = vmatpush.msrb.mxu0 %v220_v2  ;;  %701 = vmatpush.msrb.mxu1 %v237_v3  ;;  %v263_v37 = vld [vmem:[#allocation9 + $0x3c8] sm:$0xff]  ;;  %v97_v41 = vsub.f32 %v73_v34, %v85_v35  ;;  %v72_v43 = vld [vmem:[#allocation4 + $0x20] sm:$0xff]  ;;  %v104_v49 = vmul.f32 %v92_v40, %v92_v40  ;;  %v244_v52 = vld [vmem:[#allocation9 + $0x330] sm:$0xff] }
  0x31   :  { %722 = vmatpush.msrb.mxu2 %v252_v4  ;;  %741 = vmatpush.msrb.mxu3 %v269_v5  ;;  %v84_v44 = vld [vmem:[#allocation7 + $0x20] sm:$0xff]  ;;  %v118_v48 = vmul.f32 %v1301_v32, %v105_v39  ;;  %v261_v53 = vld [vmem:[#allocation9 + $0x3b8] sm:$0xff]  ;;  %v211_v55 = vld [vmem:[#allocation9 + $0x228] sm:$0xff] }
  0x32   :  { %683 = vmatpush.msrb.mxu0 %v219_v6  ;;  %702 = vmatpush.msrb.mxu1 %v236_v7  ;;  %v262_v46 = vld [vmem:[#allocation9 + $0x3c0] sm:$0xff]  ;;  %v109_v50 = vmul.f32 %v97_v41, %v97_v41  ;;  %v96_v54 = vsub.f32 %v72_v43, %v84_v44  ;;  %v228_v56 = vld [vmem:[#allocation9 + $0x2b0] sm:$0xff]  ;;  %v117_v57 = vmul.f32 %v1301_v32, %v104_v49  ;;  %v71_v58 = vld [vmem:[#allocation4 + $0x18] sm:$0xff] }
  0x33   :  { %723 = vmatpush.msrb.mxu2 %v251_v8  ;;  %742 = vmatpush.msrb.mxu3 %v268_v9  ;;  %1129 = vtanh.f32 %v118_v48  ;;  %v243_v59 = vld [vmem:[#allocation9 + $0x328] sm:$0xff]  ;;  %v260_v60 = vld [vmem:[#allocation9 + $0x3b0] sm:$0xff]  ;;  %v83_v62 = vld [vmem:[#allocation7 + $0x18] sm:$0xff] }
  0x34   :  { %684 = vmatpush.msrb.mxu0 %v218_v10  ;;  %703 = vmatpush.msrb.mxu1 %v235_v11  ;;  %v108_v61 = vmul.f32 %v96_v54, %v96_v54  ;;  %v210_v63 = vld [vmem:[#allocation9 + $0x220] sm:$0xff]  ;;  %v227_v0 = vld [vmem:[#allocation9 + $0x2a8] sm:$0xff]  ;;  %1131 = vtanh.f32 %v117_v57  ;;  %v122_v1 = vmul.f32 %v1301_v32, %v109_v50  ;;  %v95_v2 = vsub.f32 %v71_v58, %v83_v62  ;;  %v70_v3 = vld [vmem:[#allocation4 + $0x10] sm:$0xff] }
  0x35   :  { %724 = vmatpush.msrb.mxu2 %v250_v12  ;;  %743 = vmatpush.msrb.mxu3 %v267_v13  ;;  %v82_v4 = vld [vmem:[#allocation7 + $0x10] sm:$0xff]  ;;  %v75_v5 = vld [vmem:[#allocation4 + $0x38] sm:$0xff]  ;;  %v242_v7 = vld [vmem:[#allocation9 + $0x320] sm:$0xff] }
  0x36   :  { %685 = vmatpush.msrb.mxu0 %v217_v14  ;;  %704 = vmatpush.msrb.mxu1 %v234_v15  ;;  %v87_v6 = vld [vmem:[#allocation7 + $0x38] sm:$0xff]  ;;  %v259_v8 = vld [vmem:[#allocation9 + $0x3a8] sm:$0xff]  ;;  %v121_v10 = vmul.f32 %v1301_v32, %v108_v61  ;;  %v107_v11 = vmul.f32 %v95_v2, %v95_v2  ;;  %v94_v12 = vsub.f32 %v70_v3, %v82_v4  ;;  %v226_v13 = vld [vmem:[#allocation9 + $0x2a0] sm:$0xff]  ;;  %1133 = vtanh.f32 %v122_v1 }
  0x37   :  { %725 = vmatpush.msrb.mxu2 %v249_v16  ;;  %744 = vmatpush.msrb.mxu3 %v266_v17  ;;  %v209_v9 = vld [vmem:[#allocation9 + $0x218] sm:$0xff]  ;;  %v99_v14 = vsub.f32 %v75_v5, %v87_v6  ;;  %v74_v15 = vld [vmem:[#allocation4 + $0x30] sm:$0xff]  ;;  %v239_v33 = vld [vmem:[#allocation9 + $0x308] sm:$0xff] }
  0x38   :  { %686 = vmatpush.msrb.mxu0 %v216_v18  ;;  %705 = vmatpush.msrb.mxu1 %v233_v19  ;;  %v86_v16 = vld [vmem:[#allocation7 + $0x30] sm:$0xff]  ;;  %v241_v18 = vld [vmem:[#allocation9 + $0x318] sm:$0xff]  ;;  %v258_v19 = vld [vmem:[#allocation9 + $0x3a0] sm:$0xff]  ;;  %1135 = vtanh.f32 %v121_v10 }
  0x39   :  { %726 = vmatpush.msrb.mxu2 %v248_v20  ;;  %745 = vmatpush.msrb.mxu3 %v265_v21  ;;  %v1130_v17 = vpop.eup %1129  ;;  %v120_v20 = vmul.f32 %v1301_v32, %v107_v11  ;;  %v106_v21 = vmul.f32 %v94_v12, %v94_v12  ;;  %v98_v24 = vsub.f32 %v74_v15, %v86_v16  ;;  %v257_v27 = vld [vmem:[#allocation9 + $0x398] sm:$0xff]  ;;  %v224_v30 = vld [vmem:[#allocation9 + $0x290] sm:$0xff]  ;;  %v206_v35 = vld [vmem:[#allocation9 + $0x200] sm:$0xff] }
  0x3a   :  { %687 = vmatpush.msrb.mxu0 %v215_v22  ;;  %706 = vmatpush.msrb.mxu1 %v232_v23  ;;  %v208_v22 = vld [vmem:[#allocation9 + $0x210] sm:$0xff]  ;;  %v225_v23 = vld [vmem:[#allocation9 + $0x298] sm:$0xff]  ;;  %540 = vst [vmem:[#allocation1 + $0x10] ss:$2 sm:$0xff] %v1130_v17  ;;  %v111_v31 = vmul.f32 %v99_v14, %v99_v14  ;;  %v255_v39 = vld [vmem:[#allocation9 + $0x388] sm:$0xff] }
  0x3b   :  { %727 = vmatpush.msrb.mxu2 %v247_v25  ;;  %746 = vmatpush.msrb.mxu3 %v264_v26  ;;  %v1132_v25 = vpop.eup %1131  ;;  %v240_v26 = vld [vmem:[#allocation9 + $0x310] sm:$0xff]  ;;  %1137 = vtanh.f32 %v120_v20  ;;  %v238_v40 = vld [vmem:[#allocation9 + $0x300] sm:$0xff]  ;;  %v317_v41 = vld [vmem:[#allocation9 + $0x578] sm:$0xff] }
  0x3c   :  { %688 = vmatpush.msrb.mxu0 %v214_v28  ;;  %707 = vmatpush.msrb.mxu1 %v231_v29  ;;  %v119_v28 = vmul.f32 %v1301_v32, %v106_v21  ;;  %v207_v29 = vld [vmem:[#allocation9 + $0x208] sm:$0xff]  ;;  %538 = vst [vmem:[#allocation1] ss:$2 sm:$0xff] %v1132_v25  ;;  %v256_v34 = vld [vmem:[#allocation9 + $0x390] sm:$0xff]  ;;  %v222_v48 = vld [vmem:[#allocation9 + $0x280] sm:$0xff] }
  0x3d   :  { %728 = vmatpush.msrb.mxu2 %v246_v36  ;;  %747 = vmatpush.msrb.mxu3 %v263_v37  ;;  %v223_v36 = vld [vmem:[#allocation9 + $0x288] sm:$0xff]  ;;  %v110_v37 = vmul.f32 %v98_v24, %v98_v24  ;;  %v254_v49 = vld [vmem:[#allocation9 + $0x380] sm:$0xff]  ;;  %v284_v54 = vld [vmem:[#allocation9 + $0x470] sm:$0xff] }
  0x3e   :  { %689 = vmatpush.msrb.mxu0 %v213_v38  ;;  %708 = vmatpush.msrb.mxu1 %v230_v42  ;;  %1139 = vtanh.f32 %v119_v28  ;;  %v1134_v38 = vpop.eup %1133  ;;  %v124_v42 = vmul.f32 %v1301_v32, %v111_v31  ;;  %v333_v57 = vld [vmem:[#allocation9 + $0x5f8] sm:$0xff]  ;;  %v283_v58 = vld [vmem:[#allocation9 + $0x468] sm:$0xff]  ;;  %v332_v61 = vld [vmem:[#allocation9 + $0x5f0] sm:$0xff] }
  0x3f   :  { %729 = vmatpush.msrb.mxu2 %v245_v45  ;;  %748 = vmatpush.msrb.mxu3 %v262_v46  ;;  %v1136_v43 = vpop.eup %1135  ;;  %v123_v50 = vmul.f32 %v1301_v32, %v110_v37  ;;  %v282_v62 = vld [vmem:[#allocation9 + $0x460] sm:$0xff]  ;;  %v331_v1 = vld [vmem:[#allocation9 + $0x5e8] sm:$0xff]  ;;  %v281_v3 = vld [vmem:[#allocation9 + $0x458] sm:$0xff] }
  0x40   :  { %690 = vmatpush.msrb.mxu0 %v212_v47  ;;  %709 = vmatpush.msrb.mxu1 %v229_v51  ;;  %v285_v47 = vld [vmem:[#allocation9 + $0x478] sm:$0xff]  ;;  %1141 = vtanh.f32 %v124_v42  ;;  %v298_v4 = vld [vmem:[#allocation9 + $0x4e0] sm:$0xff]  ;;  %v280_v11 = vld [vmem:[#allocation9 + $0x450] sm:$0xff] }
  0x41   :  { %730 = vmatpush.msrb.mxu2 %v244_v52  ;;  %749 = vmatpush.msrb.mxu3 %v261_v53  ;;  %v547_v44 = vld.sshfl [vmem:[#allocation1 + $0x10] sm:$0xff pattern:$0x75316420]  ;;  %v548_v45 = vld.sshfl [vmem:[#allocation1 + $0x18] sm:$0xff pattern:$0x75316420]  ;;  %v1138_v46 = vpop.eup %1137  ;;  %1143 = vtanh.f32 %v123_v50 }
  0x42   :  { %691 = vmatpush.msrb.mxu0 %v211_v55  ;;  %710 = vmatpush.msrb.mxu1 %v228_v56  ;;  %554 = vst [vmem:[#allocation1 + $0x10] ss:$2 sm:$0xff] %v1134_v38  ;;  %v301_v55 = vld [vmem:[#allocation9 + $0x4f8] sm:$0xff]  ;;  %v316_v56 = vld [vmem:[#allocation9 + $0x570] sm:$0xff]  ;;  %v330_v6 = vld [vmem:[#allocation9 + $0x5e0] sm:$0xff] }
  0x43   :  { %731 = vmatpush.msrb.mxu2 %v243_v59  ;;  %750 = vmatpush.msrb.mxu3 %v260_v60  ;;  %v545_v52 = vld.sshfl [vmem:[#allocation1] sm:$0xff pattern:$0x75316420]  ;;  %v546_v53 = vld.sshfl [vmem:[#allocation1 + $0x8] sm:$0xff pattern:$0x75316420] }
  0x44   :  { %692 = vmatpush.msrb.mxu0 %v210_v63  ;;  %711 = vmatpush.msrb.mxu1 %v227_v0  ;;  %v1140_v51 = vpop.eup %1139  ;;  %553 = vst [vmem:[#allocation1] ss:$2 sm:$0xff] %v1136_v43  ;;  %v300_v59 = vld [vmem:[#allocation9 + $0x4f0] sm:$0xff]  ;;  %v315_v60 = vld [vmem:[#allocation9 + $0x568] sm:$0xff]  ;;  %v314_v0 = vld [vmem:[#allocation9 + $0x560] sm:$0xff] }
  0x45   :  { %732 = vmatpush.msrb.mxu2 %v242_v7  ;;  %751 = vmatpush.msrb.mxu3 %v259_v8  ;;  %544 = vst [vmem:[#allocation1 + $0x30] ss:$2 sm:$0xff] %v1138_v46  ;;  %v299_v63 = vld [vmem:[#allocation9 + $0x4e8] sm:$0xff]  ;;  %v313_v5 = vld [vmem:[#allocation9 + $0x558] sm:$0xff]  ;;  %v76_v7 = vld [vmem:[#allocation4 + $0x40] sm:$0xff] }
  0x46   :  { %693 = vmatpush.msrb.mxu0 %v209_v9  ;;  %712 = vmatpush.msrb.mxu1 %v226_v13  ;;  %542 = vst [vmem:[#allocation1 + $0x20] ss:$2 sm:$0xff] %v1140_v51  ;;  %v1142_v2 = vpop.eup %1141  ;;  %v88_v13 = vld [vmem:[#allocation7 + $0x40] sm:$0xff]  ;;  %v297_v15 = vld [vmem:[#allocation9 + $0x4d8] sm:$0xff]  ;;  %v312_v16 = vld [vmem:[#allocation9 + $0x550] sm:$0xff] }
  0x47   :  { %733 = vmatpush.msrb.mxu2 %v241_v18  ;;  %752 = vmatpush.msrb.mxu3 %v258_v19  ;;  %v1144_v8 = vpop.eup %1143  ;;  %v100_v17 = vsub.f32 %v76_v7, %v88_v13  ;;  %v329_v18 = vld [vmem:[#allocation9 + $0x5d8] sm:$0xff]  ;;  %v77_v19 = vld [vmem:[#allocation4 + $0x48] sm:$0xff]  ;;  %v310_v31 = vld [vmem:[#allocation9 + $0x540] sm:$0xff] }
  0x48   :  { %694 = vmatpush.msrb.mxu0 %v208_v22  ;;  %713 = vmatpush.msrb.mxu1 %v225_v23  ;;  %v89_v20 = vld [vmem:[#allocation7 + $0x48] sm:$0xff]  ;;  %v296_v22 = vld [vmem:[#allocation9 + $0x4d0] sm:$0xff]  ;;  %v309_v37 = vld [vmem:[#allocation9 + $0x538] sm:$0xff] }
  0x49   :  { %734 = vmatpush.msrb.mxu2 %v240_v26  ;;  %753 = vmatpush.msrb.mxu3 %v257_v27  ;;  %v279_v21 = vld [vmem:[#allocation9 + $0x448] sm:$0xff]  ;;  %v112_v23 = vmul.f32 %v100_v17, %v100_v17  ;;  %v101_v24 = vsub.f32 %v77_v19, %v89_v20  ;;  %v328_v26 = vld [vmem:[#allocation9 + $0x5d0] sm:$0xff]  ;;  %v278_v27 = vld [vmem:[#allocation9 + $0x440] sm:$0xff] }
  0x4a   :  { %695 = vmatpush.msrb.mxu0 %v207_v29  ;;  %714 = vmatpush.msrb.mxu1 %v224_v30  ;;  %v311_v25 = vld [vmem:[#allocation9 + $0x548] sm:$0xff]  ;;  %v326_v38 = vld [vmem:[#allocation9 + $0x5c0] sm:$0xff]  ;;  %v325_v42 = vld [vmem:[#allocation9 + $0x5b8] sm:$0xff] }
  0x4b   :  { %735 = vmatpush.msrb.mxu2 %v239_v33  ;;  %754 = vmatpush.msrb.mxu3 %v256_v34  ;;  %v295_v28 = vld [vmem:[#allocation9 + $0x4c8] sm:$0xff]  ;;  %v125_v29 = vmul.f32 %v1301_v32, %v112_v23  ;;  %v113_v30 = vmul.f32 %v101_v24, %v101_v24  ;;  %v277_v34 = vld [vmem:[#allocation9 + $0x438] sm:$0xff]  ;;  %v324_v46 = vld [vmem:[#allocation9 + $0x5b0] sm:$0xff] }
  0x4c   :  { %696 = vmatpush.msrb.mxu0 %v206_v35  ;;  %715 = vmatpush.msrb.mxu1 %v223_v36  ;;  %v551_v9 = vld.sshfl [vmem:[#allocation1 + $0x30] sm:$0xff pattern:$0x75316420]  ;;  %v552_v10 = vld.sshfl [vmem:[#allocation1 + $0x38] sm:$0xff pattern:$0x75316420] }
  0x4d   :  { %657 = vmatmul.f32.vlgmr.msra.gmra.mxu2 %v547_v44  ;;  %755 = vmatpush.msrb.mxu3 %v255_v39  ;;  %v549_v12 = vld.sshfl [vmem:[#allocation1 + $0x20] sm:$0xff pattern:$0x75316420]  ;;  %556 = vst [vmem:[#allocation1 + $0x30] ss:$2 sm:$0xff] %v1142_v2  ;;  %v327_v33 = vld [vmem:[#allocation9 + $0x5c8] sm:$0xff]  ;;  %1145 = vtanh.f32 %v125_v29  ;;  %v126_v36 = vmul.f32 %v1301_v32, %v113_v30 }
  0x4e   :  { %736 = vmatpush.msrb.mxu2 %v238_v40  ;;  %677 = vmatmul.f32.vlgmr.msra.gmra.mxu3 %v548_v45  ;;  %v550_v14 = vld.sshfl [vmem:[#allocation1 + $0x28] sm:$0xff pattern:$0x75316420]  ;;  %v276_v39 = vld [vmem:[#allocation9 + $0x430] sm:$0xff]  ;;  %v275_v43 = vld [vmem:[#allocation9 + $0x428] sm:$0xff] }
  0x4f   :  { %617 = vmatmul.f32.vlgmr.msra.gmra.mxu0 %v545_v52  ;;  %716 = vmatpush.msrb.mxu1 %v222_v48  ;;  %555 = vst [vmem:[#allocation1 + $0x20] ss:$2 sm:$0xff] %v1144_v8  ;;  %v294_v35 = vld [vmem:[#allocation9 + $0x4c0] sm:$0xff]  ;;  %v293_v40 = vld [vmem:[#allocation9 + $0x4b8] sm:$0xff]  ;;  %1147 = vtanh.f32 %v126_v36  ;;  %v292_v44 = vld [vmem:[#allocation9 + $0x4b0] sm:$0xff] }
  0x50   :  { %801 = vmatpush.msra.mxu2 %v317_v41  ;;  %761 = vmatpush.msra.mxu0 %v285_v47  ;;  %v308_v41 = vld [vmem:[#allocation9 + $0x530] sm:$0xff]  ;;  %v307_v45 = vld [vmem:[#allocation9 + $0x528] sm:$0xff]  ;;  %v274_v47 = vld [vmem:[#allocation9 + $0x420] sm:$0xff] }
  0x51   :  { %756 = vmatpush.msrb.mxu3 %v254_v49  ;;  %637 = vmatmul.f32.vlgmr.msra.gmra.mxu1 %v546_v53  ;;  %v291_v48 = vld [vmem:[#allocation9 + $0x4a8] sm:$0xff]  ;;  %v306_v49 = vld [vmem:[#allocation9 + $0x520] sm:$0xff]  ;;  %v557_v51 = vld.sshfl [vmem:[#allocation1] sm:$0xff pattern:$0x75316420] }
  0x52   :  { %762 = vmatpush.msra.mxu0 %v284_v54  ;;  %781 = vmatpush.msra.mxu1 %v301_v55  ;;  %v558_v52 = vld.sshfl [vmem:[#allocation1 + $0x8] sm:$0xff pattern:$0x75316420]  ;;  %v323_v53 = vld [vmem:[#allocation9 + $0x5a8] sm:$0xff]  ;;  %v288_v2 = vld [vmem:[#allocation9 + $0x490] sm:$0xff] }
  0x53   :  { %802 = vmatpush.msra.mxu2 %v316_v56  ;;  %821 = vmatpush.msra.mxu3 %v333_v57  ;;  %v1146_v50 = vpop.eup %1145  ;;  %v273_v54 = vld [vmem:[#allocation9 + $0x418] sm:$0xff]  ;;  %v290_v55 = vld [vmem:[#allocation9 + $0x4a0] sm:$0xff]  ;;  %v319_v8 = vld [vmem:[#allocation9 + $0x588] sm:$0xff] }
  0x54   :  { %763 = vmatpush.msra.mxu0 %v283_v58  ;;  %782 = vmatpush.msra.mxu1 %v300_v59  ;;  %565 = vst [vmem:[#allocation1] ss:$2 sm:$0xff] %v1146_v50  ;;  %v559_v57 = vld.sshfl [vmem:[#allocation1 + $0x10] sm:$0xff pattern:$0x75316420]  ;;  %v305_v59 = vld [vmem:[#allocation9 + $0x518] sm:$0xff] }
  0x55   :  { %803 = vmatpush.msra.mxu2 %v315_v60  ;;  %822 = vmatpush.msra.mxu3 %v332_v61  ;;  %v1148_v56 = vpop.eup %1147  ;;  %v560_v58 = vld.sshfl [vmem:[#allocation1 + $0x18] sm:$0xff pattern:$0x75316420]  ;;  %v322_v60 = vld [vmem:[#allocation9 + $0x5a0] sm:$0xff] }
  0x56   :  { %764 = vmatpush.msra.mxu0 %v282_v62  ;;  %783 = vmatpush.msra.mxu1 %v299_v63  ;;  %566 = vst [vmem:[#allocation1 + $0x10] ss:$2 sm:$0xff] %v1148_v56  ;;  %v272_v61 = vld [vmem:[#allocation9 + $0x410] sm:$0xff]  ;;  %v289_v62 = vld [vmem:[#allocation9 + $0x498] sm:$0xff]  ;;  %v302_v7 = vld [vmem:[#allocation9 + $0x500] sm:$0xff] }
  0x57   :  { %804 = vmatpush.msra.mxu2 %v314_v0  ;;  %823 = vmatpush.msra.mxu3 %v331_v1  ;;  %v304_v63 = vld [vmem:[#allocation9 + $0x510] sm:$0xff]  ;;  %v321_v0 = vld [vmem:[#allocation9 + $0x598] sm:$0xff]  ;;  %v271_v1 = vld [vmem:[#allocation9 + $0x408] sm:$0xff] }
  0x58   :  { %737 = vmatmul.f32.vlgmr.msrb.gmra.mxu2 %v551_v9  ;;  %757 = vmatmul.f32.vlgmr.msrb.gmra.mxu3 %v552_v10  ;;  %v349_v9 = vld [vmem:[#allocation9 + $0x678] sm:$0xff]  ;;  %v348_v13 = vld [vmem:[#allocation9 + $0x670] sm:$0xff]  ;;  %v347_v17 = vld [vmem:[#allocation9 + $0x668] sm:$0xff] }
  0x59   :  { %697 = vmatmul.f32.vlgmr.msrb.gmra.mxu0 %v549_v12  ;;  %784 = vmatpush.msra.mxu1 %v298_v4  ;;  %v320_v4 = vld [vmem:[#allocation9 + $0x590] sm:$0xff]  ;;  %v381_v10 = vld [vmem:[#allocation9 + $0x778] sm:$0xff]  ;;  %v318_v12 = vld [vmem:[#allocation9 + $0x580] sm:$0xff] }
  0x5a   :  { %765 = vmatpush.msra.mxu0 %v281_v3  ;;  %805 = vmatpush.msra.mxu2 %v313_v5  ;;  %v303_v3 = vld [vmem:[#allocation9 + $0x508] sm:$0xff]  ;;  %v270_v5 = vld [vmem:[#allocation9 + $0x400] sm:$0xff]  ;;  %v396_v20 = vld [vmem:[#allocation9 + $0x7f0] sm:$0xff] }
  0x5b   :  { %824 = vmatpush.msra.mxu3 %v330_v6  ;;  %717 = vmatmul.f32.vlgmr.msrb.gmra.mxu1 %v550_v14  ;;  %v287_v6 = vld [vmem:[#allocation9 + $0x488] sm:$0xff]  ;;  %v365_v14 = vld [vmem:[#allocation9 + $0x6f8] sm:$0xff]  ;;  %v90_v23 = vld [vmem:[#allocation7 + $0x50] sm:$0xff] }
  0x5c   :  { %766 = vmatpush.msra.mxu0 %v280_v11  ;;  %785 = vmatpush.msra.mxu1 %v297_v15  ;;  %v286_v11 = vld [vmem:[#allocation9 + $0x480] sm:$0xff]  ;;  %v380_v15 = vld [vmem:[#allocation9 + $0x770] sm:$0xff]  ;;  %v379_v19 = vld [vmem:[#allocation9 + $0x768] sm:$0xff] }
  0x5d   :  { %806 = vmatpush.msra.mxu2 %v312_v16  ;;  %825 = vmatpush.msra.mxu3 %v329_v18  ;;  %v397_v16 = vld [vmem:[#allocation9 + $0x7f8] sm:$0xff]  ;;  %v364_v18 = vld [vmem:[#allocation9 + $0x6f0] sm:$0xff]  ;;  %v363_v24 = vld [vmem:[#allocation9 + $0x6e8] sm:$0xff] }
  0x5e   :  { %767 = vmatpush.msra.mxu0 %v279_v21  ;;  %786 = vmatpush.msra.mxu1 %v296_v22  ;;  %v346_v21 = vld [vmem:[#allocation9 + $0x660] sm:$0xff]  ;;  %v78_v22 = vld [vmem:[#allocation4 + $0x50] sm:$0xff]  ;;  %v395_v29 = vld [vmem:[#allocation9 + $0x7e8] sm:$0xff] }
  0x5f   :  { %807 = vmatpush.msra.mxu2 %v311_v25  ;;  %826 = vmatpush.msra.mxu3 %v328_v26  ;;  %v102_v25 = vsub.f32 %v78_v22, %v90_v23  ;;  %v79_v26 = vld [vmem:[#allocation4 + $0x58] sm:$0xff]  ;;  %v394_v36 = vld [vmem:[#allocation9 + $0x7e0] sm:$0xff]  ;;  %v340_v56 = vld [vmem:[#allocation9 + $0x630] sm:$0xff] }
  0x60   :  { %768 = vmatpush.msra.mxu0 %v278_v27  ;;  %787 = vmatpush.msra.mxu1 %v295_v28  ;;  %v91_v27 = vld [vmem:[#allocation7 + $0x58] sm:$0xff]  ;;  %v378_v28 = vld [vmem:[#allocation9 + $0x760] sm:$0xff]  ;;  %v351_v23 = vld [vmem:[#allocation9 + $0x688] sm:$0xff] }
  0x61   :  { %808 = vmatpush.msra.mxu2 %v310_v31  ;;  %827 = vmatpush.msra.mxu3 %v327_v33  ;;  %v103_v30 = vsub.f32 %v79_v26, %v91_v27  ;;  %v345_v31 = vld [vmem:[#allocation9 + $0x658] sm:$0xff]  ;;  %v362_v33 = vld [vmem:[#allocation9 + $0x6e0] sm:$0xff] }
  0x62   :  { %769 = vmatpush.msra.mxu0 %v277_v34  ;;  %788 = vmatpush.msra.mxu1 %v294_v35  ;;  %v114_v34 = vmul.f32 %v102_v25, %v102_v25  ;;  %v377_v35 = vld [vmem:[#allocation9 + $0x758] sm:$0xff]  ;;  %v374_v50 = vld [vmem:[#allocation9 + $0x740] sm:$0xff]  ;;  %v383_v25 = vld [vmem:[#allocation9 + $0x788] sm:$0xff] }
  0x63   :  { %809 = vmatpush.msra.mxu2 %v309_v37  ;;  %828 = vmatpush.msra.mxu3 %v326_v38  ;;  %v115_v37 = vmul.f32 %v103_v30, %v103_v30  ;;  %v344_v38 = vld [vmem:[#allocation9 + $0x650] sm:$0xff]  ;;  %v334_v22 = vld [vmem:[#allocation9 + $0x600] sm:$0xff]  ;;  %v413_v26 = vld [vmem:[#allocation9 + $0x878] sm:$0xff] }
  0x64   :  { %770 = vmatpush.msra.mxu0 %v276_v39  ;;  %789 = vmatpush.msra.mxu1 %v293_v40  ;;  %v361_v39 = vld [vmem:[#allocation9 + $0x6d8] sm:$0xff]  ;;  %v127_v40 = vmul.f32 %v1301_v32, %v114_v34  ;;  %v412_v30 = vld [vmem:[#allocation9 + $0x870] sm:$0xff] }
  0x65   :  { %810 = vmatpush.msra.mxu2 %v308_v41  ;;  %829 = vmatpush.msra.mxu3 %v325_v42  ;;  %v376_v41 = vld [vmem:[#allocation9 + $0x750] sm:$0xff]  ;;  %v393_v42 = vld [vmem:[#allocation9 + $0x7d8] sm:$0xff] }
  0x66   :  { %771 = vmatpush.msra.mxu0 %v275_v43  ;;  %790 = vmatpush.msra.mxu1 %v292_v44  ;;  %v128_v43 = vmul.f32 %v1301_v32, %v115_v37  ;;  %v343_v44 = vld [vmem:[#allocation9 + $0x648] sm:$0xff]  ;;  %1149 = vtanh.f32 %v127_v40  ;;  %v445_v27 = vld [vmem:[#allocation9 + $0x978] sm:$0xff] }
  0x67   :  { %811 = vmatpush.msra.mxu2 %v307_v45  ;;  %830 = vmatpush.msra.mxu3 %v324_v46  ;;  %v360_v45 = vld [vmem:[#allocation9 + $0x6d0] sm:$0xff]  ;;  %v375_v46 = vld [vmem:[#allocation9 + $0x748] sm:$0xff]  ;;  %v461_v34 = vld [vmem:[#allocation9 + $0x9f8] sm:$0xff] }
  0x68   :  { %772 = vmatpush.msra.mxu0 %v274_v47  ;;  %791 = vmatpush.msra.mxu1 %v291_v48  ;;  %v392_v47 = vld [vmem:[#allocation9 + $0x7d0] sm:$0xff]  ;;  %1151 = vtanh.f32 %v128_v43  ;;  %v342_v48 = vld [vmem:[#allocation9 + $0x640] sm:$0xff]  ;;  %v443_v37 = vld [vmem:[#allocation9 + $0x968] sm:$0xff] }
  0x69   :  { %812 = vmatpush.msra.mxu2 %v306_v49  ;;  %831 = vmatpush.msra.mxu3 %v323_v53  ;;  %v359_v49 = vld [vmem:[#allocation9 + $0x6c8] sm:$0xff]  ;;  %v358_v53 = vld [vmem:[#allocation9 + $0x6c0] sm:$0xff]  ;;  %v409_v43 = vld [vmem:[#allocation9 + $0x858] sm:$0xff] }
  0x6a   :  { %773 = vmatpush.msra.mxu0 %v273_v54  ;;  %792 = vmatpush.msra.mxu1 %v290_v55  ;;  %v373_v54 = vld [vmem:[#allocation9 + $0x738] sm:$0xff]  ;;  %v390_v55 = vld [vmem:[#allocation9 + $0x7c0] sm:$0xff]  ;;  %v427_v40 = vld [vmem:[#allocation9 + $0x8e8] sm:$0xff] }
  0x6b   :  { %813 = vmatpush.msra.mxu2 %v305_v59  ;;  %832 = vmatpush.msra.mxu3 %v322_v60  ;;  %v1315_v59 = vld.sshfl [vmem:[#allocation1 + $0x20] sm:$0xff pattern:$0x75316420] }
  0x6c   :  { %774 = vmatpush.msra.mxu0 %v272_v61  ;;  %793 = vmatpush.msra.mxu1 %v289_v62  ;;  %v1150_v60 = vpop.eup %1149  ;;  %v1317_v61 = vld.sshfl [vmem:[#allocation1 + $0x30] sm:$0xff pattern:$0x75316420]  ;;  %v1319_v62 = vld.sshfl [vmem:[#allocation1 + $0x28] sm:$0xff pattern:$0x75316420] }
  0x6d   :  { %814 = vmatpush.msra.mxu2 %v304_v63  ;;  %833 = vmatpush.msra.mxu3 %v321_v0  ;;  %v389_v0 = vld [vmem:[#allocation9 + $0x7b8] sm:$0xff]  ;;  %567 = vst [vmem:[#allocation1 + $0x20] ss:$2 sm:$0xff] %v1150_v60  ;;  %v422_v60 = vld [vmem:[#allocation9 + $0x8c0] sm:$0xff] }
  0x6e   :  { %775 = vmatpush.msra.mxu0 %v271_v1  ;;  %794 = vmatpush.msra.mxu1 %v288_v2  ;;  %v1152_v63 = vpop.eup %1151  ;;  %v1321_v1 = vld.sshfl [vmem:[#allocation1 + $0x38] sm:$0xff pattern:$0x75316420] }
  0x6f   :  { %815 = vmatpush.msra.mxu2 %v303_v3  ;;  %834 = vmatpush.msra.mxu3 %v320_v4  ;;  %v339_v2 = vld [vmem:[#allocation9 + $0x628] sm:$0xff]  ;;  %v356_v3 = vld [vmem:[#allocation9 + $0x6b0] sm:$0xff]  ;;  %568 = vst [vmem:[#allocation1 + $0x30] ss:$2 sm:$0xff] %v1152_v63 }
  0x70   :  { %776 = vmatpush.msra.mxu0 %v270_v5  ;;  %795 = vmatpush.msra.mxu1 %v287_v6  ;;  %v371_v4 = vld [vmem:[#allocation9 + $0x728] sm:$0xff]  ;;  %v388_v5 = vld [vmem:[#allocation9 + $0x7b0] sm:$0xff]  ;;  %v338_v6 = vld [vmem:[#allocation9 + $0x620] sm:$0xff] }
  0x71   :  { %816 = vmatpush.msra.mxu2 %v302_v7  ;;  %835 = vmatpush.msra.mxu3 %v319_v8  ;;  %v355_v7 = vld [vmem:[#allocation9 + $0x6a8] sm:$0xff]  ;;  %v370_v8 = vld [vmem:[#allocation9 + $0x720] sm:$0xff]  ;;  %v404_v63 = vld [vmem:[#allocation9 + $0x830] sm:$0xff] }
  0x72   :  { %777 = vmatmul.f32.vlgmr.msra.gmra.mxu0 %v557_v51  ;;  %817 = vmatmul.f32.vlgmr.msra.gmra.mxu2 %v559_v57  ;;  %v391_v51 = vld [vmem:[#allocation9 + $0x7c8] sm:$0xff]  ;;  %v357_v57 = vld [vmem:[#allocation9 + $0x6b8] sm:$0xff] }
  0x73   :  { %841 = vmatpush.msrb.mxu0 %v349_v9  ;;  %881 = vmatpush.msrb.mxu2 %v381_v10  ;;  %v387_v9 = vld [vmem:[#allocation9 + $0x7a8] sm:$0xff]  ;;  %v337_v10 = vld [vmem:[#allocation9 + $0x618] sm:$0xff] }
  0x74   :  { %796 = vmatpush.msra.mxu1 %v286_v11  ;;  %836 = vmatpush.msra.mxu3 %v318_v12  ;;  %v354_v11 = vld [vmem:[#allocation9 + $0x6a0] sm:$0xff]  ;;  %v369_v12 = vld [vmem:[#allocation9 + $0x718] sm:$0xff] }
  0x75   :  { %797 = vmatmul.f32.vlgmr.msra.gmra.mxu1 %v558_v52  ;;  %837 = vmatmul.f32.vlgmr.msra.gmra.mxu3 %v560_v58  ;;  %v341_v52 = vld [vmem:[#allocation9 + $0x638] sm:$0xff]  ;;  %v372_v58 = vld [vmem:[#allocation9 + $0x730] sm:$0xff] }
  0x76   :  { %842 = vmatpush.msrb.mxu0 %v348_v13  ;;  %861 = vmatpush.msrb.mxu1 %v365_v14  ;;  %v386_v13 = vld [vmem:[#allocation9 + $0x7a0] sm:$0xff]  ;;  %v336_v14 = vld [vmem:[#allocation9 + $0x610] sm:$0xff] }
  0x77   :  { %882 = vmatpush.msrb.mxu2 %v380_v15  ;;  %901 = vmatpush.msrb.mxu3 %v397_v16  ;;  %v353_v15 = vld [vmem:[#allocation9 + $0x698] sm:$0xff]  ;;  %v368_v16 = vld [vmem:[#allocation9 + $0x710] sm:$0xff] }
  0x78   :  { %843 = vmatpush.msrb.mxu0 %v347_v17  ;;  %862 = vmatpush.msrb.mxu1 %v364_v18  ;;  %v385_v17 = vld [vmem:[#allocation9 + $0x798] sm:$0xff]  ;;  %v335_v18 = vld [vmem:[#allocation9 + $0x608] sm:$0xff] }
  0x79   :  { %883 = vmatpush.msrb.mxu2 %v379_v19  ;;  %902 = vmatpush.msrb.mxu3 %v396_v20  ;;  %v352_v19 = vld [vmem:[#allocation9 + $0x690] sm:$0xff]  ;;  %v367_v20 = vld [vmem:[#allocation9 + $0x708] sm:$0xff] }
  0x7a   :  { %844 = vmatpush.msrb.mxu0 %v346_v21  ;;  %863 = vmatpush.msrb.mxu1 %v363_v24  ;;  %v384_v21 = vld [vmem:[#allocation9 + $0x790] sm:$0xff]  ;;  %v366_v24 = vld [vmem:[#allocation9 + $0x700] sm:$0xff] }
  0x7b   :  { %884 = vmatpush.msrb.mxu2 %v378_v28  ;;  %903 = vmatpush.msrb.mxu3 %v395_v29  ;;  %v350_v28 = vld [vmem:[#allocation9 + $0x680] sm:$0xff] }
  0x7c   :  { %845 = vmatpush.msrb.mxu0 %v345_v31  ;;  %864 = vmatpush.msrb.mxu1 %v362_v33  ;;  %v382_v29 = vld [vmem:[#allocation9 + $0x780] sm:$0xff]  ;;  %v429_v31 = vld [vmem:[#allocation9 + $0x8f8] sm:$0xff]  ;;  %v444_v33 = vld [vmem:[#allocation9 + $0x970] sm:$0xff] }
  0x7d   :  { %885 = vmatpush.msrb.mxu2 %v377_v35  ;;  %904 = vmatpush.msrb.mxu3 %v394_v36  ;;  %v411_v35 = vld [vmem:[#allocation9 + $0x868] sm:$0xff]  ;;  %v428_v36 = vld [vmem:[#allocation9 + $0x8f0] sm:$0xff] }
  0x7e   :  { %846 = vmatpush.msrb.mxu0 %v344_v38  ;;  %865 = vmatpush.msrb.mxu1 %v361_v39  ;;  %v460_v38 = vld [vmem:[#allocation9 + $0x9f0] sm:$0xff]  ;;  %v410_v39 = vld [vmem:[#allocation9 + $0x860] sm:$0xff] }
  0x7f   :  { %886 = vmatpush.msrb.mxu2 %v376_v41  ;;  %905 = vmatpush.msrb.mxu3 %v393_v42  ;;  %v442_v41 = vld [vmem:[#allocation9 + $0x960] sm:$0xff]  ;;  %v459_v42 = vld [vmem:[#allocation9 + $0x9e8] sm:$0xff] }
  0x80   :  { %847 = vmatpush.msrb.mxu0 %v343_v44  ;;  %866 = vmatpush.msrb.mxu1 %v360_v45  ;;  %v426_v44 = vld [vmem:[#allocation9 + $0x8e0] sm:$0xff]  ;;  %v441_v45 = vld [vmem:[#allocation9 + $0x958] sm:$0xff] }
  0x81   :  { %887 = vmatpush.msrb.mxu2 %v375_v46  ;;  %906 = vmatpush.msrb.mxu3 %v392_v47  ;;  %v458_v46 = vld [vmem:[#allocation9 + $0x9e0] sm:$0xff]  ;;  %v408_v47 = vld [vmem:[#allocation9 + $0x850] sm:$0xff] }
  0x82   :  { %848 = vmatpush.msrb.mxu0 %v342_v48  ;;  %867 = vmatpush.msrb.mxu1 %v359_v49  ;;  %v425_v48 = vld [vmem:[#allocation9 + $0x8d8] sm:$0xff]  ;;  %v440_v49 = vld [vmem:[#allocation9 + $0x950] sm:$0xff] }
  0x83   :  { %888 = vmatpush.msrb.mxu2 %v374_v50  ;;  %907 = vmatpush.msrb.mxu3 %v391_v51  ;;  %v457_v50 = vld [vmem:[#allocation9 + $0x9d8] sm:$0xff]  ;;  %v407_v51 = vld [vmem:[#allocation9 + $0x848] sm:$0xff] }
  0x84   :  { %849 = vmatpush.msrb.mxu0 %v341_v52  ;;  %868 = vmatpush.msrb.mxu1 %v358_v53  ;;  %v424_v52 = vld [vmem:[#allocation9 + $0x8d0] sm:$0xff]  ;;  %v439_v53 = vld [vmem:[#allocation9 + $0x948] sm:$0xff] }
  0x85   :  { %889 = vmatpush.msrb.mxu2 %v373_v54  ;;  %908 = vmatpush.msrb.mxu3 %v390_v55  ;;  %v456_v54 = vld [vmem:[#allocation9 + $0x9d0] sm:$0xff]  ;;  %v406_v55 = vld [vmem:[#allocation9 + $0x840] sm:$0xff] }
  0x86   :  { %850 = vmatpush.msrb.mxu0 %v340_v56  ;;  %869 = vmatpush.msrb.mxu1 %v357_v57  ;;  %v423_v56 = vld [vmem:[#allocation9 + $0x8c8] sm:$0xff]  ;;  %v438_v57 = vld [vmem:[#allocation9 + $0x940] sm:$0xff] }
  0x87   :  { %890 = vmatpush.msrb.mxu2 %v372_v58  ;;  %909 = vmatpush.msrb.mxu3 %v389_v0  ;;  %v455_v58 = vld [vmem:[#allocation9 + $0x9c8] sm:$0xff]  ;;  %v421_v0 = vld [vmem:[#allocation9 + $0x8b8] sm:$0xff] }
  0x88   :  { %851 = vmatpush.msrb.mxu0 %v339_v2  ;;  %870 = vmatpush.msrb.mxu1 %v356_v3  ;;  %v453_v2 = vld [vmem:[#allocation9 + $0x9b8] sm:$0xff]  ;;  %v403_v3 = vld [vmem:[#allocation9 + $0x828] sm:$0xff] }
  0x89   :  { %891 = vmatpush.msrb.mxu2 %v371_v4  ;;  %910 = vmatpush.msrb.mxu3 %v388_v5  ;;  %v420_v4 = vld [vmem:[#allocation9 + $0x8b0] sm:$0xff]  ;;  %v435_v5 = vld [vmem:[#allocation9 + $0x928] sm:$0xff] }
  0x8a   :  { %852 = vmatpush.msrb.mxu0 %v338_v6  ;;  %871 = vmatpush.msrb.mxu1 %v355_v7  ;;  %v452_v6 = vld [vmem:[#allocation9 + $0x9b0] sm:$0xff]  ;;  %v402_v7 = vld [vmem:[#allocation9 + $0x820] sm:$0xff] }
  0x8b   :  { %892 = vmatpush.msrb.mxu2 %v370_v8  ;;  %911 = vmatpush.msrb.mxu3 %v387_v9  ;;  %v419_v8 = vld [vmem:[#allocation9 + $0x8a8] sm:$0xff]  ;;  %v434_v9 = vld [vmem:[#allocation9 + $0x920] sm:$0xff] }
  0x8c   :  { %853 = vmatpush.msrb.mxu0 %v337_v10  ;;  %872 = vmatpush.msrb.mxu1 %v354_v11  ;;  %v451_v10 = vld [vmem:[#allocation9 + $0x9a8] sm:$0xff]  ;;  %v401_v11 = vld [vmem:[#allocation9 + $0x818] sm:$0xff] }
  0x8d   :  { %893 = vmatpush.msrb.mxu2 %v369_v12  ;;  %912 = vmatpush.msrb.mxu3 %v386_v13  ;;  %v418_v12 = vld [vmem:[#allocation9 + $0x8a0] sm:$0xff]  ;;  %v433_v13 = vld [vmem:[#allocation9 + $0x918] sm:$0xff] }
  0x8e   :  { %854 = vmatpush.msrb.mxu0 %v336_v14  ;;  %873 = vmatpush.msrb.mxu1 %v353_v15  ;;  %v450_v14 = vld [vmem:[#allocation9 + $0x9a0] sm:$0xff]  ;;  %v400_v15 = vld [vmem:[#allocation9 + $0x810] sm:$0xff] }
  0x8f   :  { %894 = vmatpush.msrb.mxu2 %v368_v16  ;;  %913 = vmatpush.msrb.mxu3 %v385_v17  ;;  %v417_v16 = vld [vmem:[#allocation9 + $0x898] sm:$0xff]  ;;  %v432_v17 = vld [vmem:[#allocation9 + $0x910] sm:$0xff] }
  0x90   :  { %855 = vmatpush.msrb.mxu0 %v335_v18  ;;  %874 = vmatpush.msrb.mxu1 %v352_v19  ;;  %v449_v18 = vld [vmem:[#allocation9 + $0x998] sm:$0xff]  ;;  %v399_v19 = vld [vmem:[#allocation9 + $0x808] sm:$0xff] }
  0x91   :  { %895 = vmatpush.msrb.mxu2 %v367_v20  ;;  %914 = vmatpush.msrb.mxu3 %v384_v21  ;;  %v416_v20 = vld [vmem:[#allocation9 + $0x890] sm:$0xff]  ;;  %v431_v21 = vld [vmem:[#allocation9 + $0x908] sm:$0xff] }
  0x92   :  { %856 = vmatpush.msrb.mxu0 %v334_v22  ;;  %875 = vmatpush.msrb.mxu1 %v351_v23  ;;  %v448_v22 = vld [vmem:[#allocation9 + $0x990] sm:$0xff]  ;;  %v398_v23 = vld [vmem:[#allocation9 + $0x800] sm:$0xff] }
  0x93   :  { %896 = vmatpush.msrb.mxu2 %v366_v24  ;;  %915 = vmatpush.msrb.mxu3 %v383_v25  ;;  %v415_v24 = vld [vmem:[#allocation9 + $0x888] sm:$0xff]  ;;  %v430_v25 = vld [vmem:[#allocation9 + $0x900] sm:$0xff] }
  0x94   :  { %857 = vmatmul.f32.vlgmr.msrb.gmra.mxu0 %v1315_v59  ;;  %897 = vmatmul.f32.vlgmr.msrb.gmra.mxu2 %v1317_v61  ;;  %v405_v59 = vld [vmem:[#allocation9 + $0x838] sm:$0xff] }
  0x95   :  { %921 = vmatpush.msra.mxu0 %v413_v26  ;;  %961 = vmatpush.msra.mxu2 %v445_v27  ;;  %v437_v61 = vld [vmem:[#allocation9 + $0x938] sm:$0xff]  ;;  %v447_v26 = vld [vmem:[#allocation9 + $0x988] sm:$0xff] }
  0x96   :  { %876 = vmatpush.msrb.mxu1 %v350_v28  ;;  %916 = vmatpush.msrb.mxu3 %v382_v29  ;;  %v569_v27 = vld.sshfl [vmem:[#allocation1] sm:$0xff pattern:$0x75316420]  ;;  %v571_v28 = vld.sshfl [vmem:[#allocation1 + $0x10] sm:$0xff pattern:$0x75316420] }
  0x97   :  { %877 = vmatmul.f32.vlgmr.msrb.gmra.mxu1 %v1319_v62  ;;  %917 = vmatmul.f32.vlgmr.msrb.gmra.mxu3 %v1321_v1  ;;  %v454_v62 = vld [vmem:[#allocation9 + $0x9c0] sm:$0xff]  ;;  %v436_v1 = vld [vmem:[#allocation9 + $0x930] sm:$0xff]  ;;  %v477_v29 = vld [vmem:[#allocation9 + $0xa78] sm:$0xff] }
  0x98   :  { %922 = vmatpush.msra.mxu0 %v412_v30  ;;  %941 = vmatpush.msra.mxu1 %v429_v31  ;;  %v509_v30 = vld [vmem:[#allocation9 + $0xb78] sm:$0xff]  ;;  %v414_v31 = vld [vmem:[#allocation9 + $0x880] sm:$0xff] }
  0x99   :  { %962 = vmatpush.msra.mxu2 %v444_v33  ;;  %981 = vmatpush.msra.mxu3 %v461_v34  ;;  %v446_v33 = vld [vmem:[#allocation9 + $0x980] sm:$0xff] }
  0x9a   :  { %923 = vmatpush.msra.mxu0 %v411_v35  ;;  %942 = vmatpush.msra.mxu1 %v428_v36  ;;  %v570_v34 = vld.sshfl [vmem:[#allocation1 + $0x8] sm:$0xff pattern:$0x75316420]  ;;  %v572_v35 = vld.sshfl [vmem:[#allocation1 + $0x18] sm:$0xff pattern:$0x75316420] }
  0x9b   :  { %963 = vmatpush.msra.mxu2 %v443_v37  ;;  %982 = vmatpush.msra.mxu3 %v460_v38  ;;  %v476_v36 = vld [vmem:[#allocation9 + $0xa70] sm:$0xff]  ;;  %v493_v37 = vld [vmem:[#allocation9 + $0xaf8] sm:$0xff] }
  0x9c   :  { %924 = vmatpush.msra.mxu0 %v410_v39  ;;  %943 = vmatpush.msra.mxu1 %v427_v40  ;;  %v508_v38 = vld [vmem:[#allocation9 + $0xb70] sm:$0xff]  ;;  %v525_v39 = vld [vmem:[#allocation9 + $0xbf8] sm:$0xff]  ;;  %v475_v40 = vld [vmem:[#allocation9 + $0xa68] sm:$0xff] }
  0x9d   :  { %964 = vmatpush.msra.mxu2 %v442_v41  ;;  %983 = vmatpush.msra.mxu3 %v459_v42  ;;  %v492_v41 = vld [vmem:[#allocation9 + $0xaf0] sm:$0xff]  ;;  %v507_v42 = vld [vmem:[#allocation9 + $0xb68] sm:$0xff] }
  0x9e   :  { %925 = vmatpush.msra.mxu0 %v409_v43  ;;  %944 = vmatpush.msra.mxu1 %v426_v44  ;;  %v524_v43 = vld [vmem:[#allocation9 + $0xbf0] sm:$0xff]  ;;  %v474_v44 = vld [vmem:[#allocation9 + $0xa60] sm:$0xff] }
  0x9f   :  { %965 = vmatpush.msra.mxu2 %v441_v45  ;;  %984 = vmatpush.msra.mxu3 %v458_v46  ;;  %v491_v45 = vld [vmem:[#allocation9 + $0xae8] sm:$0xff]  ;;  %v506_v46 = vld [vmem:[#allocation9 + $0xb60] sm:$0xff] }
  0xa0   :  { %926 = vmatpush.msra.mxu0 %v408_v47  ;;  %945 = vmatpush.msra.mxu1 %v425_v48  ;;  %v523_v47 = vld [vmem:[#allocation9 + $0xbe8] sm:$0xff]  ;;  %v473_v48 = vld [vmem:[#allocation9 + $0xa58] sm:$0xff] }
  0xa1   :  { %966 = vmatpush.msra.mxu2 %v440_v49  ;;  %985 = vmatpush.msra.mxu3 %v457_v50  ;;  %v490_v49 = vld [vmem:[#allocation9 + $0xae0] sm:$0xff]  ;;  %v505_v50 = vld [vmem:[#allocation9 + $0xb58] sm:$0xff] }
  0xa2   :  { %927 = vmatpush.msra.mxu0 %v407_v51  ;;  %946 = vmatpush.msra.mxu1 %v424_v52  ;;  %v522_v51 = vld [vmem:[#allocation9 + $0xbe0] sm:$0xff]  ;;  %v472_v52 = vld [vmem:[#allocation9 + $0xa50] sm:$0xff] }
  0xa3   :  { %967 = vmatpush.msra.mxu2 %v439_v53  ;;  %986 = vmatpush.msra.mxu3 %v456_v54  ;;  %v489_v53 = vld [vmem:[#allocation9 + $0xad8] sm:$0xff]  ;;  %v504_v54 = vld [vmem:[#allocation9 + $0xb50] sm:$0xff] }
  0xa4   :  { %928 = vmatpush.msra.mxu0 %v406_v55  ;;  %947 = vmatpush.msra.mxu1 %v423_v56  ;;  %v521_v55 = vld [vmem:[#allocation9 + $0xbd8] sm:$0xff]  ;;  %v471_v56 = vld [vmem:[#allocation9 + $0xa48] sm:$0xff] }
  0xa5   :  { %968 = vmatpush.msra.mxu2 %v438_v57  ;;  %987 = vmatpush.msra.mxu3 %v455_v58  ;;  %v488_v57 = vld [vmem:[#allocation9 + $0xad0] sm:$0xff]  ;;  %v503_v58 = vld [vmem:[#allocation9 + $0xb48] sm:$0xff] }
  0xa6   :  { %929 = vmatpush.msra.mxu0 %v405_v59  ;;  %948 = vmatpush.msra.mxu1 %v422_v60  ;;  %v520_v59 = vld [vmem:[#allocation9 + $0xbd0] sm:$0xff]  ;;  %v470_v60 = vld [vmem:[#allocation9 + $0xa40] sm:$0xff] }
  0xa7   :  { %969 = vmatpush.msra.mxu2 %v437_v61  ;;  %988 = vmatpush.msra.mxu3 %v454_v62  ;;  %v487_v61 = vld [vmem:[#allocation9 + $0xac8] sm:$0xff]  ;;  %v502_v62 = vld [vmem:[#allocation9 + $0xb40] sm:$0xff] }
  0xa8   :  { %930 = vmatpush.msra.mxu0 %v404_v63  ;;  %949 = vmatpush.msra.mxu1 %v421_v0  ;;  %v519_v63 = vld [vmem:[#allocation9 + $0xbc8] sm:$0xff]  ;;  %v469_v0 = vld [vmem:[#allocation9 + $0xa38] sm:$0xff] }
  0xa9   :  { %970 = vmatpush.msra.mxu2 %v436_v1  ;;  %989 = vmatpush.msra.mxu3 %v453_v2  ;;  %v486_v1 = vld [vmem:[#allocation9 + $0xac0] sm:$0xff]  ;;  %v501_v2 = vld [vmem:[#allocation9 + $0xb38] sm:$0xff] }
  0xaa   :  { %931 = vmatpush.msra.mxu0 %v403_v3  ;;  %950 = vmatpush.msra.mxu1 %v420_v4  ;;  %v518_v3 = vld [vmem:[#allocation9 + $0xbc0] sm:$0xff]  ;;  %v468_v4 = vld [vmem:[#allocation9 + $0xa30] sm:$0xff] }
  0xab   :  { %971 = vmatpush.msra.mxu2 %v435_v5  ;;  %990 = vmatpush.msra.mxu3 %v452_v6  ;;  %v485_v5 = vld [vmem:[#allocation9 + $0xab8] sm:$0xff]  ;;  %v500_v6 = vld [vmem:[#allocation9 + $0xb30] sm:$0xff] }
  0xac   :  { %932 = vmatpush.msra.mxu0 %v402_v7  ;;  %951 = vmatpush.msra.mxu1 %v419_v8  ;;  %v517_v7 = vld [vmem:[#allocation9 + $0xbb8] sm:$0xff]  ;;  %v467_v8 = vld [vmem:[#allocation9 + $0xa28] sm:$0xff] }
  0xad   :  { %972 = vmatpush.msra.mxu2 %v434_v9  ;;  %991 = vmatpush.msra.mxu3 %v451_v10  ;;  %v484_v9 = vld [vmem:[#allocation9 + $0xab0] sm:$0xff]  ;;  %v499_v10 = vld [vmem:[#allocation9 + $0xb28] sm:$0xff] }
  0xae   :  { %933 = vmatpush.msra.mxu0 %v401_v11  ;;  %952 = vmatpush.msra.mxu1 %v418_v12  ;;  %v516_v11 = vld [vmem:[#allocation9 + $0xbb0] sm:$0xff]  ;;  %v466_v12 = vld [vmem:[#allocation9 + $0xa20] sm:$0xff] }
  0xaf   :  { %973 = vmatpush.msra.mxu2 %v433_v13  ;;  %992 = vmatpush.msra.mxu3 %v450_v14  ;;  %v483_v13 = vld [vmem:[#allocation9 + $0xaa8] sm:$0xff]  ;;  %v498_v14 = vld [vmem:[#allocation9 + $0xb20] sm:$0xff] }
  0xb0   :  { %934 = vmatpush.msra.mxu0 %v400_v15  ;;  %953 = vmatpush.msra.mxu1 %v417_v16  ;;  %v515_v15 = vld [vmem:[#allocation9 + $0xba8] sm:$0xff]  ;;  %v465_v16 = vld [vmem:[#allocation9 + $0xa18] sm:$0xff] }
  0xb1   :  { %974 = vmatpush.msra.mxu2 %v432_v17  ;;  %993 = vmatpush.msra.mxu3 %v449_v18  ;;  %v482_v17 = vld [vmem:[#allocation9 + $0xaa0] sm:$0xff]  ;;  %v497_v18 = vld [vmem:[#allocation9 + $0xb18] sm:$0xff] }
  0xb2   :  { %935 = vmatpush.msra.mxu0 %v399_v19  ;;  %954 = vmatpush.msra.mxu1 %v416_v20  ;;  %v514_v19 = vld [vmem:[#allocation9 + $0xba0] sm:$0xff]  ;;  %v464_v20 = vld [vmem:[#allocation9 + $0xa10] sm:$0xff] }
  0xb3   :  { %975 = vmatpush.msra.mxu2 %v431_v21  ;;  %994 = vmatpush.msra.mxu3 %v448_v22  ;;  %v481_v21 = vld [vmem:[#allocation9 + $0xa98] sm:$0xff]  ;;  %v496_v22 = vld [vmem:[#allocation9 + $0xb10] sm:$0xff] }
  0xb4   :  { %936 = vmatpush.msra.mxu0 %v398_v23  ;;  %955 = vmatpush.msra.mxu1 %v415_v24  ;;  %v513_v23 = vld [vmem:[#allocation9 + $0xb98] sm:$0xff]  ;;  %v463_v24 = vld [vmem:[#allocation9 + $0xa08] sm:$0xff] }
  0xb5   :  { %976 = vmatpush.msra.mxu2 %v430_v25  ;;  %995 = vmatpush.msra.mxu3 %v447_v26  ;;  %v480_v25 = vld [vmem:[#allocation9 + $0xa90] sm:$0xff]  ;;  %v495_v26 = vld [vmem:[#allocation9 + $0xb08] sm:$0xff] }
  0xb6   :  { %937 = vmatmul.f32.vlgmr.msra.gmra.mxu0 %v569_v27  ;;  %977 = vmatmul.f32.vlgmr.msra.gmra.mxu2 %v571_v28  ;;  %v512_v27 = vld [vmem:[#allocation9 + $0xb90] sm:$0xff]  ;;  %v462_v28 = vld [vmem:[#allocation9 + $0xa00] sm:$0xff] }
  0xb7   :  { %1001 = vmatpush.msrb.mxu0 %v477_v29  ;;  %1041 = vmatpush.msrb.mxu2 %v509_v30  ;;  %v479_v29 = vld [vmem:[#allocation9 + $0xa88] sm:$0xff]  ;;  %v494_v30 = vld [vmem:[#allocation9 + $0xb00] sm:$0xff] }
  0xb8   :  { %956 = vmatpush.msra.mxu1 %v414_v31  ;;  %996 = vmatpush.msra.mxu3 %v446_v33  ;;  %v511_v31 = vld [vmem:[#allocation9 + $0xb88] sm:$0xff]  ;;  %v573_v33 = vld.sshfl [vmem:[#allocation1 + $0x20] sm:$0xff pattern:$0x75316420] }
  0xb9   :  { %957 = vmatmul.f32.vlgmr.msra.gmra.mxu1 %v570_v34  ;;  %997 = vmatmul.f32.vlgmr.msra.gmra.mxu3 %v572_v35  ;;  %v575_v34 = vld.sshfl [vmem:[#allocation1 + $0x30] sm:$0xff pattern:$0x75316420] }
  0xba   :  { %1002 = vmatpush.msrb.mxu0 %v476_v36  ;;  %1021 = vmatpush.msrb.mxu1 %v493_v37  ;;  %v478_v35 = vld [vmem:[#allocation9 + $0xa80] sm:$0xff] }
  0xbb   :  { %1042 = vmatpush.msrb.mxu2 %v508_v38  ;;  %1061 = vmatpush.msrb.mxu3 %v525_v39  ;;  %v510_v36 = vld [vmem:[#allocation9 + $0xb80] sm:$0xff]  ;;  %v576_v38 = vld.sshfl [vmem:[#allocation1 + $0x38] sm:$0xff pattern:$0x75316420] }
  0xbc   :  { %1003 = vmatpush.msrb.mxu0 %v475_v40  ;;  %1022 = vmatpush.msrb.mxu1 %v492_v41  ;;  %v574_v37 = vld.sshfl [vmem:[#allocation1 + $0x28] sm:$0xff pattern:$0x75316420] }
  0xbd   :  { %1043 = vmatpush.msrb.mxu2 %v507_v42  ;;  %1062 = vmatpush.msrb.mxu3 %v524_v43 }
  0xbe   :  { %1004 = vmatpush.msrb.mxu0 %v474_v44  ;;  %1023 = vmatpush.msrb.mxu1 %v491_v45 }
  0xbf   :  { %1044 = vmatpush.msrb.mxu2 %v506_v46  ;;  %1063 = vmatpush.msrb.mxu3 %v523_v47 }
  0xc0   :  { %1005 = vmatpush.msrb.mxu0 %v473_v48  ;;  %1024 = vmatpush.msrb.mxu1 %v490_v49 }
  0xc1   :  { %1045 = vmatpush.msrb.mxu2 %v505_v50  ;;  %1064 = vmatpush.msrb.mxu3 %v522_v51 }
  0xc2   :  { %1006 = vmatpush.msrb.mxu0 %v472_v52  ;;  %1025 = vmatpush.msrb.mxu1 %v489_v53 }
  0xc3   :  { %1046 = vmatpush.msrb.mxu2 %v504_v54  ;;  %1065 = vmatpush.msrb.mxu3 %v521_v55 }
  0xc4   :  { %1007 = vmatpush.msrb.mxu0 %v471_v56  ;;  %1026 = vmatpush.msrb.mxu1 %v488_v57 }
  0xc5   :  { %1047 = vmatpush.msrb.mxu2 %v503_v58  ;;  %1066 = vmatpush.msrb.mxu3 %v520_v59 }
  0xc6   :  { %1008 = vmatpush.msrb.mxu0 %v470_v60  ;;  %1027 = vmatpush.msrb.mxu1 %v487_v61  ;;  %v1262_v60 = vmov 0.0  }
  0xc7   :  { %1048 = vmatpush.msrb.mxu2 %v502_v62  ;;  %1067 = vmatpush.msrb.mxu3 %v519_v63  ;;  %67 = vst [vmem:[#allocation2] sm:$0xf] %v1262_v60 }
  0xc8   :  { %1009 = vmatpush.msrb.mxu0 %v469_v0  ;;  %1028 = vmatpush.msrb.mxu1 %v486_v1 }
  0xc9   :  { %1049 = vmatpush.msrb.mxu2 %v501_v2  ;;  %1068 = vmatpush.msrb.mxu3 %v518_v3 }
  0xca   :  { %1010 = vmatpush.msrb.mxu0 %v468_v4  ;;  %1029 = vmatpush.msrb.mxu1 %v485_v5 }
  0xcb   :  { %1050 = vmatpush.msrb.mxu2 %v500_v6  ;;  %1069 = vmatpush.msrb.mxu3 %v517_v7 }
  0xcc   :  { %1011 = vmatpush.msrb.mxu0 %v467_v8  ;;  %1030 = vmatpush.msrb.mxu1 %v484_v9  ;;  %v618_v40 = vpop.f32.mrf.mxu0 }
  0xcd   :  { %1051 = vmatpush.msrb.mxu2 %v499_v10  ;;  %1070 = vmatpush.msrb.mxu3 %v516_v11 }
  0xce   :  { %1012 = vmatpush.msrb.mxu0 %v466_v12  ;;  %1031 = vmatpush.msrb.mxu1 %v483_v13  ;;  %v638_v39 = vpop.f32.mrf.mxu1 }
  0xcf   :  { %1052 = vmatpush.msrb.mxu2 %v498_v14  ;;  %1071 = vmatpush.msrb.mxu3 %v515_v15  ;;  %v639_v41 = vadd.f32 %v638_v39, %v618_v40 }
  0xd0   :  { %1013 = vmatpush.msrb.mxu0 %v465_v16  ;;  %1032 = vmatpush.msrb.mxu1 %v482_v17  ;;  %v658_v42 = vpop.f32.mrf.mxu2 }
  0xd1   :  { %1053 = vmatpush.msrb.mxu2 %v497_v18  ;;  %1072 = vmatpush.msrb.mxu3 %v514_v19  ;;  %v659_v43 = vadd.f32 %v658_v42, %v639_v41  ;;  %v678_v44 = vpop.f32.mrf.mxu3 }
  0xd2   :  { %1014 = vmatpush.msrb.mxu0 %v464_v20  ;;  %1033 = vmatpush.msrb.mxu1 %v481_v21  ;;  %v141_v21 = vld [vmem:[#allocation2] sm:$0xf] }
  0xd3   :  { %1054 = vmatpush.msrb.mxu2 %v496_v22  ;;  %1073 = vmatpush.msrb.mxu3 %v513_v23  ;;  %v679_v45 = vadd.f32 %v678_v44, %v659_v43 }
  0xd4   :  { %1015 = vmatpush.msrb.mxu0 %v463_v24  ;;  %1034 = vmatpush.msrb.mxu1 %v480_v25 }
  0xd5   :  { %1055 = vmatpush.msrb.mxu2 %v495_v26  ;;  %1074 = vmatpush.msrb.mxu3 %v512_v27 }
  0xd6   :  { %1016 = vmatpush.msrb.mxu0 %v462_v28  ;;  %1035 = vmatpush.msrb.mxu1 %v479_v29  ;;  %v698_v46 = vpop.f32.mrf.mxu0 }
  0xd7   :  { %1056 = vmatpush.msrb.mxu2 %v494_v30  ;;  %1075 = vmatpush.msrb.mxu3 %v511_v31  ;;  %v699_v47 = vadd.f32 %v698_v46, %v679_v45 }
  0xd8   :  { %1017 = vmatmul.f32.vlgmr.msrb.gmra.mxu0 %v573_v33  ;;  %1057 = vmatmul.f32.vlgmr.msrb.gmra.mxu2 %v575_v34  ;;  %v718_v48 = vpop.f32.mrf.mxu1 }
  0xd9   :  { %1036 = vmatpush.msrb.mxu1 %v478_v35  ;;  %1076 = vmatpush.msrb.mxu3 %v510_v36  ;;  %v719_v49 = vadd.f32 %v718_v48, %v699_v47 }
  0xda   :  { %1037 = vmatmul.f32.vlgmr.msrb.gmra.mxu1 %v574_v37  ;;  %1077 = vmatmul.f32.vlgmr.msrb.gmra.mxu3 %v576_v38 }
  0xdb   :  { %v738_v50 = vpop.f32.mrf.mxu2  ;;  %v758_v52 = vpop.f32.mrf.mxu3 }
  0xdc   :  { %v739_v51 = vadd.f32 %v738_v50, %v719_v49 }
  0xde   :  { %v759_v54 = vadd.f32 %v758_v52, %v739_v51 }
  0xef   :  { %v778_v53 = vpop.f32.mrf.mxu0 }
  0xf0   :  { %v779_v55 = vadd.f32 %v778_v53, %v759_v54 }
  0xf2   :  { %v798_v56 = vpop.f32.mrf.mxu1 }
  0xf3   :  { %v799_v58 = vadd.f32 %v798_v56, %v779_v55 }
  0xf5   :  { %v818_v57 = vpop.f32.mrf.mxu2 }
  0xf6   :  { %v819_v59 = vadd.f32 %v818_v57, %v799_v58 }
  0xf8   :  { %v838_v61 = vpop.f32.mrf.mxu3 }
  0xf9   :  { %v839_v63 = vadd.f32 %v838_v61, %v819_v59 }
 0x111   :  { %v858_v62 = vpop.f32.mrf.mxu0 }
 0x112   :  { %v859_v0 = vadd.f32 %v858_v62, %v839_v63 }
 0x114   :  { %v878_v1 = vpop.f32.mrf.mxu1 }
 0x115   :  { %v879_v3 = vadd.f32 %v878_v1, %v859_v0 }
 0x117   :  { %v898_v2 = vpop.f32.mrf.mxu2 }
 0x118   :  { %v899_v4 = vadd.f32 %v898_v2, %v879_v3 }
 0x11a   :  { %v918_v5 = vpop.f32.mrf.mxu3 }
 0x11b   :  { %v919_v7 = vadd.f32 %v918_v5, %v899_v4 }
 0x133   :  { %v938_v6 = vpop.f32.mrf.mxu0 }
 0x134   :  { %v939_v8 = vadd.f32 %v938_v6, %v919_v7 }
 0x136   :  { %v958_v9 = vpop.f32.mrf.mxu1 }
 0x137   :  { %v959_v11 = vadd.f32 %v958_v9, %v939_v8 }
 0x139   :  { %v978_v10 = vpop.f32.mrf.mxu2 }
 0x13a   :  { %v979_v12 = vadd.f32 %v978_v10, %v959_v11 }
 0x13c   :  { %v998_v13 = vpop.f32.mrf.mxu3 }
 0x13d   :  { %v999_v14 = vadd.f32 %v998_v13, %v979_v12 }
 0x155   :  { %v1018_v15 = vpop.f32.mrf.mxu0 }
 0x156   :  { %v1019_v16 = vadd.f32 %v1018_v15, %v999_v14 }
 0x157   :  { %v1038_v17 = vpop.f32.mrf.mxu1 }
 0x158   :  { %v1039_v18 = vadd.f32 %v1038_v17, %v1019_v16 }
 0x15b   :  { %v1058_v19 = vpop.f32.mrf.mxu2 }
 0x15c   :  { %v1059_v20 = vadd.f32 %v1058_v19, %v1039_v18 }
 0x15d   :  { %v1078_v22 = vpop.f32.mrf.mxu3 }
 0x15e   :  { %v1079_v23 = vadd.f32 %v1078_v22, %v1059_v20 }
 0x160   :  { %v1081_v24 = vadd.f32 %v1079_v23, %v141_v21 }
 0x162   :  { %1082 = vst [vmem:[#allocation2] sm:$0xf] %v1081_v24 }
 0x169   :  { %v1086_v25 = vld [vmem:[#allocation2] sm:$0xf] }
 0x16a   :  { %v1087_v26 = vmul.f32 %v1086_v25, %v1301_v32 }
 0x16c   :  { %1153 = vtanh.f32 %v1087_v26 }
 0x172   :  { %v1154_v27 = vpop.eup %1153 }
 0x173   :  { %v1090_v28 = vsel %vm1089_vm0, %v1154_v27, 0.0 }
 0x174   :  { %1091 = vadd.xlane.f32.xlu0 %v1090_v28 }
 0x1e7   :  { %v1092_v29 = vpop.xlane.xlu0 %1091 }
 0x1e8   :  { %v1093_v30 = vrot.slane %v1092_v29, 4 }
 0x1ea   :  { %v1094_v31 = vadd.f32 %v1093_v30, %v1092_v29 }
 0x1ec   :  { %v1095_v33 = vrot.slane %v1094_v31, 2 }
 0x1ee   :  { %v1096_v34 = vadd.f32 %v1095_v33, %v1094_v31 }
 0x1f0   :  { %v1097_v35 = vrot.slane %v1096_v34, 1 }
 0x1f2   :  { %v1098_v36 = vadd.f32 %v1097_v35, %v1096_v34 }
 0x1f4   :  { %1120 = vpush %v1098_v36 }
 0x225   :  { %s1121_s9 = spop %1120 }
 0x226   :  { %v1100_v32 = vstv %s1121_s9 }
 0x227   :  { %1101 = vst [vmem:[#allocation10] sm:$0xff] %v1100_v32 }
 0x228   :  { %1112 = dma.vmem_to_hbm [thread:$0]  %s1108_s5, 128, %s1110_s8, [#allocation6]  }
 0x229   :  { %1255 = dma.done.wait [#allocation6], 128  }
 0x22a   :  { %1256 = vsyncadd [#allocation6], 4294967168 }
 0x22b   :  { %1117 = vsyncpa [#allocation5], 1 }
 0x22c   :  { %1118 = vsyncpa [#allocation8], 1 }
 0x22d   :  { %1119 = vsyncpa [#allocation6], 1 }

</bundles_post_ra>
